<compile_context>
chip_gen: v5e
topology: v5e:2x2
jax: 0.10.0
libtpu: 0.0.40
codegen_flags: <defaults>
</compile_context>

<pallas_src>
import functools
import math

import jax
import jax.numpy as jnp
from jax.experimental import pallas as pl
from jax.experimental.pallas import tpu as pltpu


# ----------------------------- in-kernel helpers -----------------------------

def _layer_norm(x, gamma, beta, eps=1e-5):
    # x: (M, D) f32, gamma/beta: (1, D) f32; matches torch.nn.LayerNorm (biased var)
    mu = jnp.mean(x, axis=-1, keepdims=True)
    xc = x - mu
    var = jnp.mean(xc * xc, axis=-1, keepdims=True)
    inv = jax.lax.rsqrt(var + eps)
    return xc * inv * gamma + beta


def _softmax_last(x):
    # NOTE: approx reciprocal (EUP slot) -> ~1e-4 rel. error vs exact softmax.
    m = jnp.max(x, axis=-1, keepdims=True)
    e = jnp.exp(x - m)
    return e * pl.reciprocal(jnp.sum(e, axis=-1, keepdims=True), approx=True)


# ----------------------------- fused encoder kernel --------------------------

def encoder_kernel(emb_ref, mask_ref, embg_ref, embb_ref,
                   wqkv_ref, bqkv_ref, wo_ref, bo_ref,
                   ln1g_ref, ln1b_ref,
                   w1_ref, b1_ref, w2_ref, b2_ref,
                   ln2g_ref, ln2b_ref,
                   o_ref, x_ref,
                   *, n_head, tb, seq):
    layer = pl.program_id(1)
    n_layers = pl.num_programs(1)
    H = emb_ref.shape[-1]
    dh = H // n_head
    M = tb * seq
    scale = 1.0 / math.sqrt(dh)

    # --- layer 0: embedding LayerNorm into the VMEM-resident activation scratch
    @pl.when(layer == 0)
    def _():
        emb = emb_ref[...].astype(jnp.float32).reshape(M, H)
        x_ref[...] = _layer_norm(emb, embg_ref[...], embb_ref[...])

    x = x_ref[...]                                     # (M, H) f32, resident
    mask = mask_ref[...].astype(jnp.float32)           # (tb, 1, S) additive mask

    xb = x.astype(jnp.bfloat16)

    # --- fused QKV projection: one bf16 MXU matmul, f32 accumulation ---
    qkv = (jnp.dot(xb, wqkv_ref[0], preferred_element_type=jnp.float32)
           + bqkv_ref[0])                              # (M, 3H) f32
    q, k, v = qkv[:, :H], qkv[:, H:2 * H], qkv[:, 2 * H:]

    wo = wo_ref[0]                                     # (H, H) bf16

    # --- attention: per-head batched einsums, output projection accumulated
    #     per head (no head-merge concatenate). ---
    attn = jnp.zeros((M, H), jnp.float32)
    for h in range(n_head):                            # static, small n_head
        sl = slice(h * dh, (h + 1) * dh)
        qh = q[:, sl].reshape(tb, seq, dh).astype(jnp.bfloat16)
        kh = k[:, sl].reshape(tb, seq, dh).astype(jnp.bfloat16)
        vh = v[:, sl].reshape(tb, seq, dh).astype(jnp.bfloat16)
        s = jnp.einsum('bqd,bkd->bqk', qh, kh,
                       preferred_element_type=jnp.float32) * scale + mask
        p = _softmax_last(s)                           # dropout = identity
        ctx = jnp.einsum('bqk,bkd->bqd', p.astype(jnp.bfloat16), vh,
                         preferred_element_type=jnp.float32)       # (tb, S, dh)
        attn = attn + jnp.dot(ctx.reshape(M, dh).astype(jnp.bfloat16),
                              wo[sl, :],
                              preferred_element_type=jnp.float32)
    attn = attn + bo_ref[0]

    # --- residual + LayerNorm ---
    x = _layer_norm(attn + x, ln1g_ref[0], ln1b_ref[0])

    # --- FeedForward: relu(x W1 + b1) W2 + b2, residual + LayerNorm ---
    h1 = jnp.maximum(
        jnp.dot(x.astype(jnp.bfloat16), w1_ref[0],
                preferred_element_type=jnp.float32) + b1_ref[0], 0.0)
    y = jnp.dot(h1.astype(jnp.bfloat16), w2_ref[0],
                preferred_element_type=jnp.float32) + b2_ref[0]
    x = _layer_norm(y + x, ln2g_ref[0], ln2b_ref[0])

    x_ref[...] = x                                     # carry to next layer

    @pl.when(layer == n_layers - 1)
    def _():
        o_ref[...] = x.reshape(tb, seq, H).astype(o_ref.dtype)


# ----------------------------- wrapper ----------------------------------------

def encoder_forward(input_ids, attention_mask, params, n_head, batch_tile=1):
    B, S = input_ids.shape
    H = params['word_emb'].shape[1]
    L = params['wqkv'].shape[0]
    inter = params['w1'].shape[-1]

    TB = batch_tile
    assert B % TB == 0, "batch must be divisible by batch_tile"
    nb = B // TB

    # Embedding gather is glue (plain JAX); activations shipped to kernel in bf16.
    emb = (jnp.take(params['word_emb'], input_ids, axis=0)
           + params['pos_emb'][:S][None, :, :]).astype(jnp.bfloat16)   # (B, S, H)
    # attention_mask [B,1,1,S] is already additive (0 / -1e9), per the torch spec.
    mask = attention_mask.reshape(B, 1, S).astype(jnp.float32)

    # Matmul weights streamed as bf16; biases / LayerNorm params stay f32.
    wqkv = params['wqkv'].astype(jnp.bfloat16)
    wo = params['wo'].astype(jnp.bfloat16)
    w1 = params['w1'].astype(jnp.bfloat16)
    w2 = params['w2'].astype(jnp.bfloat16)

    def stacked(shape):
        # one layer's slice of a (L, *shape) stacked parameter, streamed per l step
        return pl.BlockSpec((1,) + tuple(shape),
                            lambda b, l: (l,) + (0,) * len(shape))

    in_specs = [
        pl.BlockSpec((TB, S, H), lambda b, l: (b, 0, 0)),      # emb (resident per b)
        pl.BlockSpec((TB, 1, S), lambda b, l: (b, 0, 0)),      # mask
        pl.BlockSpec((1, H), lambda b, l: (0, 0)),             # emb LN gamma
        pl.BlockSpec((1, H), lambda b, l: (0, 0)),             # emb LN beta
        stacked((H, 3 * H)), stacked((1, 3 * H)),              # wqkv, bqkv
        stacked((H, H)), stacked((1, H)),                      # wo, bo
        stacked((1, H)), stacked((1, H)),                      # ln1 gamma/beta
        stacked((H, inter)), stacked((1, inter)),              # w1, b1
        stacked((inter, H)), stacked((1, H)),                  # w2, b2
        stacked((1, H)), stacked((1, H)),                      # ln2 gamma/beta
    ]

    # Explicit VMEM budget (v7x only has 64 MiB physical): double-buffered
    # per-layer bf16 weights + resident activation + headroom.
    per_layer_w = 2 * (3 * H * H + H * H + 2 * H * inter) + 4 * (10 * H + inter)
    act_bytes = TB * S * (8 * 4 * H + 2 * 4 * inter + 2 * 2 * H)
    vmem_limit = int(min(64 * 2 ** 20,
                         max(16 * 2 ** 20, 2 * (2 * per_layer_w + act_bytes))))

    flops = 2 * L * B * S * (3 * H * H + H * H + 2 * H * inter) + 4 * L * B * S * S * H
    transcendentals = L * B * n_head * S * S + (2 * L + 1) * B * S
    bytes_accessed = nb * L * per_layer_w + B * S * H * (2 + 4) + B * S * 4

    kernel = functools.partial(encoder_kernel, n_head=n_head, tb=TB, seq=S)

    out = pl.pallas_call(
        kernel,
        out_shape=jax.ShapeDtypeStruct((B, S, H), jnp.float32),
        grid_spec=pltpu.PrefetchScalarGridSpec(
            num_scalar_prefetch=0,
            grid=(nb, L),                                  # (parallel, arbitrary)
            in_specs=in_specs,
            out_specs=pl.BlockSpec((TB, S, H), lambda b, l: (b, 0, 0)),
            scratch_shapes=[pltpu.VMEM((TB * S, H), jnp.float32)],   # resident x
        ),
        compiler_params=pltpu.CompilerParams(
            dimension_semantics=("parallel", "arbitrary"),
            vmem_limit_bytes=vmem_limit,
        ),
        cost_estimate=pl.CostEstimate(
            flops=int(flops),
            transcendentals=int(transcendentals),
            bytes_accessed=int(bytes_accessed),
        ),
    )(emb, mask,
      params['emb_ln_g'], params['emb_ln_b'],
      wqkv, params['bqkv'], wo, params['bo'],
      params['ln1g'], params['ln1b'],
      w1, params['b1'], w2, params['b2'],
      params['ln2g'], params['ln2b'])
    return out


# ----------------------------- parameter init ---------------------------------

def init_params(key, vocab_size, max_len, hidden, inter, n_layers):
    def nrm(k, shape, std=0.02):
        return std * jax.random.normal(k, shape, dtype=jnp.float32)

    keys = jax.random.split(key, 2 + n_layers)
    stacks = {name: [] for name in ('wqkv', 'bqkv', 'wo', 'bo', 'ln1g', 'ln1b',
                                    'w1', 'b1', 'w2', 'b2', 'ln2g', 'ln2b')}
    for l in range(n_layers):
        lk = jax.random.split(keys[2 + l], 6)
        # weights stored as [in, out] (pre-transposed vs. torch nn.Linear)
        wq, wk, wv = (nrm(lk[0], (hidden, hidden)),
                      nrm(lk[1], (hidden, hidden)),
                      nrm(lk[2], (hidden, hidden)))
        stacks['wqkv'].append(jnp.concatenate([wq, wk, wv], axis=-1))      # (H, 3H)
        stacks['bqkv'].append(jnp.zeros((1, 3 * hidden), jnp.float32))
        stacks['wo'].append(nrm(lk[3], (hidden, hidden)))
        stacks['bo'].append(jnp.zeros((1, hidden), jnp.float32))
        stacks['ln1g'].append(jnp.ones((1, hidden), jnp.float32))
        stacks['ln1b'].append(jnp.zeros((1, hidden), jnp.float32))
        stacks['w1'].append(nrm(lk[4], (hidden, inter)))
        stacks['b1'].append(jnp.zeros((1, inter), jnp.float32))
        stacks['w2'].append(nrm(lk[5], (inter, hidden)))
        stacks['b2'].append(jnp.zeros((1, hidden), jnp.float32))
        stacks['ln2g'].append(jnp.ones((1, hidden), jnp.float32))
        stacks['ln2b'].append(jnp.zeros((1, hidden), jnp.float32))

    params = {
        'word_emb': nrm(keys[0], (vocab_size, hidden)),
        'pos_emb': nrm(keys[1], (max_len, hidden)),
        'emb_ln_g': jnp.ones((1, hidden), jnp.float32),
        'emb_ln_b': jnp.zeros((1, hidden), jnp.float32),
    }
    for name, vals in stacks.items():
        params[name] = jnp.stack(vals, axis=0)    # leading layer axis (L, ...)
    return params


# ----------------------------- main --------------------------------------------

if __name__ == "__main__":
    VOCAB, MAX_LEN = 100, 16
    HIDDEN, INTER, N_HEAD, N_LAYERS = 32, 64, 4, 2
    B, S = 2, 8

    root = jax.random.PRNGKey(0)
    k_param, k_ids = jax.random.split(root)

    params = init_params(k_param, VOCAB, MAX_LEN, HIDDEN, INTER, N_LAYERS)
    input_ids = jax.random.randint(k_ids, (B, S), 0, VOCAB, dtype=jnp.int32)

    # attention_mask [B, 1, 1, S]: additive (0 for valid tokens, -1e9 for padding).
    lengths = jnp.array([S, 5], dtype=jnp.int32)
    pos = jnp.arange(S)[None, :]                           # (1, S)
    attention_mask = jnp.where(pos < lengths[:, None], 0.0, -1e9).astype(jnp.float32)
    attention_mask = attention_mask[:, None, None, :]      # (B, 1, 1, S)

    out = encoder_forward(input_ids, attention_mask, params, N_HEAD, batch_tile=1)
    out = jax.block_until_ready(out)
    assert out.shape == (B, S, HIDDEN) and out.dtype == jnp.float32
    assert bool(jnp.all(jnp.isfinite(out)))
    print("KERNEL_OK")
</pallas_src>

<mosaic_0001>
module attributes {stable_mosaic.version = 11 : i64} {
  func.func @encoder_kernel(%arg0: i32, %arg1: i32, %arg2: memref<1x8x32xbf16, #tpu.memory_space<vmem>>, %arg3: memref<1x1x8xf32, #tpu.memory_space<vmem>>, %arg4: memref<1x32xf32, #tpu.memory_space<vmem>>, %arg5: memref<1x32xf32, #tpu.memory_space<vmem>>, %arg6: memref<1x32x96xbf16, #tpu.memory_space<vmem>>, %arg7: memref<1x1x96xf32, #tpu.memory_space<vmem>>, %arg8: memref<1x32x32xbf16, #tpu.memory_space<vmem>>, %arg9: memref<1x1x32xf32, #tpu.memory_space<vmem>>, %arg10: memref<1x1x32xf32, #tpu.memory_space<vmem>>, %arg11: memref<1x1x32xf32, #tpu.memory_space<vmem>>, %arg12: memref<1x32x64xbf16, #tpu.memory_space<vmem>>, %arg13: memref<1x1x64xf32, #tpu.memory_space<vmem>>, %arg14: memref<1x64x32xbf16, #tpu.memory_space<vmem>>, %arg15: memref<1x1x32xf32, #tpu.memory_space<vmem>>, %arg16: memref<1x1x32xf32, #tpu.memory_space<vmem>>, %arg17: memref<1x1x32xf32, #tpu.memory_space<vmem>>, %arg18: memref<1x8x32xf32, #tpu.memory_space<vmem>>, %arg19: memref<8x32xf32, #tpu.memory_space<vmem>>) attributes {dimension_semantics = [#tpu.dimension_semantics<parallel>, #tpu.dimension_semantics<arbitrary>], iteration_bounds = array<i64: 2, 2>, scalar_prefetch = 0 : i64, scratch_operands = 1 : i64, tpu.core_type = #tpu.core_type<tc>, window_params = [{transform_indices = @transform_0, window_bounds = array<i64: 1, 8, 32>}, {transform_indices = @transform_1, window_bounds = array<i64: 1, 1, 8>}, {pipeline_mode = #tpu.pipeline_mode<synchronous>, transform_indices = @transform_2, window_bounds = array<i64: 1, 32>}, {pipeline_mode = #tpu.pipeline_mode<synchronous>, transform_indices = @transform_3, window_bounds = array<i64: 1, 32>}, {transform_indices = @transform_4, window_bounds = array<i64: 1, 32, 96>}, {transform_indices = @transform_5, window_bounds = array<i64: 1, 1, 96>}, {transform_indices = @transform_6, window_bounds = array<i64: 1, 32, 32>}, {transform_indices = @transform_7, window_bounds = array<i64: 1, 1, 32>}, {transform_indices = @transform_8, window_bounds = array<i64: 1, 1, 32>}, {transform_indices = @transform_9, window_bounds = array<i64: 1, 1, 32>}, {transform_indices = @transform_10, window_bounds = array<i64: 1, 32, 64>}, {transform_indices = @transform_11, window_bounds = array<i64: 1, 1, 64>}, {transform_indices = @transform_12, window_bounds = array<i64: 1, 64, 32>}, {transform_indices = @transform_13, window_bounds = array<i64: 1, 1, 32>}, {transform_indices = @transform_14, window_bounds = array<i64: 1, 1, 32>}, {transform_indices = @transform_15, window_bounds = array<i64: 1, 1, 32>}, {transform_indices = @transform_16, window_bounds = array<i64: 1, 8, 32>}]} {
    %c0_i32 = arith.constant 0 : i32
    %0 = arith.cmpi eq, %arg1, %c0_i32 : i32
    %1 = arith.extui %0 : i1 to i32
    %c0_i32_0 = arith.constant 0 : i32
    %2 = arith.cmpi ne, %1, %c0_i32_0 : i32
    scf.if %2 {
      %c0_82 = arith.constant 0 : index
      %c0_83 = arith.constant 0 : index
      %c0_84 = arith.constant 0 : index
      %219 = vector.load %arg2[%c0_82, %c0_83, %c0_84] : memref<1x8x32xbf16, #tpu.memory_space<vmem>>, vector<1x8x32xbf16>
      %220 = arith.extf %219 : vector<1x8x32xbf16> to vector<1x8x32xf32>
      %221 = vector.shape_cast %220 : vector<1x8x32xf32> to vector<8x32xf32>
      %c0_85 = arith.constant 0 : index
      %c0_86 = arith.constant 0 : index
      %222 = vector.load %arg4[%c0_85, %c0_86] : memref<1x32xf32, #tpu.memory_space<vmem>>, vector<1x32xf32>
      %c0_87 = arith.constant 0 : index
      %c0_88 = arith.constant 0 : index
      %223 = vector.load %arg5[%c0_87, %c0_88] : memref<1x32xf32, #tpu.memory_space<vmem>>, vector<1x32xf32>
      %cst_89 = arith.constant dense<0.000000e+00> : vector<8xf32>
      %224 = vector.multi_reduction <add>, %221, %cst_89 [1] : vector<8x32xf32> to vector<8xf32>
      %225 = vector.shape_cast %224 : vector<8xf32> to vector<8x1xf32>
      %cst_90 = arith.constant 3.200000e+01 : f32
      %226 = vector.broadcast %cst_90 : f32 to vector<8x1xf32>
      %227 = arith.divf %225, %226 : vector<8x1xf32>
      %228 = vector.broadcast %227 : vector<8x1xf32> to vector<8x32xf32>
      %229 = arith.subf %221, %228 : vector<8x32xf32>
      %230 = arith.mulf %229, %229 : vector<8x32xf32>
      %cst_91 = arith.constant dense<0.000000e+00> : vector<8xf32>
      %231 = vector.multi_reduction <add>, %230, %cst_91 [1] : vector<8x32xf32> to vector<8xf32>
      %232 = vector.shape_cast %231 : vector<8xf32> to vector<8x1xf32>
      %cst_92 = arith.constant 3.200000e+01 : f32
      %233 = vector.broadcast %cst_92 : f32 to vector<8x1xf32>
      %234 = arith.divf %232, %233 : vector<8x1xf32>
      %cst_93 = arith.constant 9.99999974E-6 : f32
      %235 = vector.broadcast %cst_93 : f32 to vector<8x1xf32>
      %236 = arith.addf %234, %235 : vector<8x1xf32>
      %237 = math.rsqrt %236 : vector<8x1xf32>
      %238 = vector.broadcast %237 : vector<8x1xf32> to vector<8x32xf32>
      %239 = arith.mulf %229, %238 : vector<8x32xf32>
      %240 = vector.broadcast %222 : vector<1x32xf32> to vector<8x32xf32>
      %241 = arith.mulf %239, %240 : vector<8x32xf32>
      %242 = vector.broadcast %223 : vector<1x32xf32> to vector<8x32xf32>
      %243 = arith.addf %241, %242 : vector<8x32xf32>
      %c0_94 = arith.constant 0 : index
      %c0_95 = arith.constant 0 : index
      %244 = vector.load %arg19[%c0_94, %c0_95] : memref<8x32xf32, #tpu.memory_space<vmem>>, vector<8x32xf32>
      tpu.vector_store %arg19[%c0_94, %c0_95], %243 {strides = array<i32>} : memref<8x32xf32, #tpu.memory_space<vmem>>, vector<8x32xf32>,
    } else {
    }
    %c0 = arith.constant 0 : index
    %c0_1 = arith.constant 0 : index
    %3 = vector.load %arg19[%c0, %c0_1] : memref<8x32xf32, #tpu.memory_space<vmem>>, vector<8x32xf32>
    %c0_2 = arith.constant 0 : index
    %c0_3 = arith.constant 0 : index
    %c0_4 = arith.constant 0 : index
    %4 = vector.load %arg3[%c0_2, %c0_3, %c0_4] : memref<1x1x8xf32, #tpu.memory_space<vmem>>, vector<1x1x8xf32>
    %5 = arith.truncf %3 : vector<8x32xf32> to vector<8x32xbf16>
    %c0_5 = arith.constant 0 : index
    %c0_6 = arith.constant 0 : index
    %c0_7 = arith.constant 0 : index
    %6 = vector.load %arg6[%c0_5, %c0_6, %c0_7] : memref<1x32x96xbf16, #tpu.memory_space<vmem>>, vector<1x32x96xbf16>
    %7 = vector.shape_cast %6 : vector<1x32x96xbf16> to vector<32x96xbf16>
    %cst = arith.constant dense<0.000000e+00> : vector<8x96xf32>
    %8 = tpu.matmul %5, %7, %cst {dimension_numbers = #tpu.dot_dimension_numbers<[1], [0], [0], [1], [0, 0, 1, 1], [], []>} : vector<8x32xbf16>, vector<32x96xbf16>, vector<8x96xf32> -> vector<8x96xf32>
    %c0_8 = arith.constant 0 : index
    %c0_9 = arith.constant 0 : index
    %c0_10 = arith.constant 0 : index
    %9 = vector.load %arg7[%c0_8, %c0_9, %c0_10] : memref<1x1x96xf32, #tpu.memory_space<vmem>>, vector<1x1x96xf32>
    %10 = vector.shape_cast %9 : vector<1x1x96xf32> to vector<1x96xf32>
    %11 = vector.broadcast %10 : vector<1x96xf32> to vector<8x96xf32>
    %12 = arith.addf %8, %11 : vector<8x96xf32>
    %13 = vector.extract_strided_slice %12 {offsets = [0, 0], sizes = [8, 32], strides = [1, 1]} : vector<8x96xf32> to vector<8x32xf32>
    %14 = vector.extract_strided_slice %12 {offsets = [0, 32], sizes = [8, 32], strides = [1, 1]} : vector<8x96xf32> to vector<8x32xf32>
    %15 = vector.extract_strided_slice %12 {offsets = [0, 64], sizes = [8, 32], strides = [1, 1]} : vector<8x96xf32> to vector<8x32xf32>
    %c0_11 = arith.constant 0 : index
    %c0_12 = arith.constant 0 : index
    %c0_13 = arith.constant 0 : index
    %16 = vector.load %arg8[%c0_11, %c0_12, %c0_13] : memref<1x32x32xbf16, #tpu.memory_space<vmem>>, vector<1x32x32xbf16>
    %17 = vector.shape_cast %16 : vector<1x32x32xbf16> to vector<32x32xbf16>
    %cst_14 = arith.constant 0.000000e+00 : f32
    %18 = vector.broadcast %cst_14 : f32 to vector<8x32xf32>
    %19 = vector.extract_strided_slice %13 {offsets = [0, 0], sizes = [8, 8], strides = [1, 1]} : vector<8x32xf32> to vector<8x8xf32>
    %20 = vector.shape_cast %19 : vector<8x8xf32> to vector<1x8x8xf32>
    %21 = arith.truncf %20 : vector<1x8x8xf32> to vector<1x8x8xbf16>
    %22 = vector.extract_strided_slice %14 {offsets = [0, 0], sizes = [8, 8], strides = [1, 1]} : vector<8x32xf32> to vector<8x8xf32>
    %23 = vector.shape_cast %22 : vector<8x8xf32> to vector<1x8x8xf32>
    %24 = arith.truncf %23 : vector<1x8x8xf32> to vector<1x8x8xbf16>
    %25 = vector.extract_strided_slice %15 {offsets = [0, 0], sizes = [8, 8], strides = [1, 1]} : vector<8x32xf32> to vector<8x8xf32>
    %26 = vector.shape_cast %25 : vector<8x8xf32> to vector<1x8x8xf32>
    %27 = arith.truncf %26 : vector<1x8x8xf32> to vector<1x8x8xbf16>
    "tpu.trace_start"() <{level = 10 : i32, message = "bqd,bkd->bqk"}> : () -> ()
    %cst_15 = arith.constant dense<0.000000e+00> : vector<1x8x8xf32>
    %28 = tpu.matmul %21, %24, %cst_15 {dimension_numbers = #tpu.dot_dimension_numbers<[2], [2], [1], [1], [0, 0, 0, 1, 1, 1], [0], [0]>} : vector<1x8x8xbf16>, vector<1x8x8xbf16>, vector<1x8x8xf32> -> vector<1x8x8xf32>
    "tpu.trace_stop"() : () -> ()
    %cst_16 = arith.constant 0.353553385 : f32
    %29 = vector.broadcast %cst_16 : f32 to vector<1x8x8xf32>
    %30 = arith.mulf %28, %29 : vector<1x8x8xf32>
    %31 = vector.broadcast %4 : vector<1x1x8xf32> to vector<1x8x8xf32>
    %32 = arith.addf %30, %31 : vector<1x8x8xf32>
    %cst_17 = arith.constant dense<0xFF800000> : vector<1x8xf32>
    %33 = vector.multi_reduction <maximumf>, %32, %cst_17 [2] : vector<1x8x8xf32> to vector<1x8xf32>
    %34 = vector.shape_cast %33 : vector<1x8xf32> to vector<1x8x1xf32>
    %35 = vector.broadcast %34 : vector<1x8x1xf32> to vector<1x8x8xf32>
    %36 = arith.subf %32, %35 : vector<1x8x8xf32>
    %37 = math.exp %36 : vector<1x8x8xf32>
    %cst_18 = arith.constant dense<0.000000e+00> : vector<1x8xf32>
    %38 = vector.multi_reduction <add>, %37, %cst_18 [2] : vector<1x8x8xf32> to vector<1x8xf32>
    %39 = vector.shape_cast %38 : vector<1x8xf32> to vector<1x8x1xf32>
    %40 = tpu.reciprocal %39 {approx = true} : vector<1x8x1xf32> -> vector<1x8x1xf32>
    %41 = vector.broadcast %40 : vector<1x8x1xf32> to vector<1x8x8xf32>
    %42 = arith.mulf %37, %41 : vector<1x8x8xf32>
    %43 = arith.truncf %42 : vector<1x8x8xf32> to vector<1x8x8xbf16>
    "tpu.trace_start"() <{level = 10 : i32, message = "bqk,bkd->bqd"}> : () -> ()
    %cst_19 = arith.constant dense<0.000000e+00> : vector<1x8x8xf32>
    %44 = tpu.matmul %43, %27, %cst_19 {dimension_numbers = #tpu.dot_dimension_numbers<[2], [1], [1], [2], [0, 0, 0, 1, 1, 2], [0], [0]>} : vector<1x8x8xbf16>, vector<1x8x8xbf16>, vector<1x8x8xf32> -> vector<1x8x8xf32>
    "tpu.trace_stop"() : () -> ()
    %45 = vector.shape_cast %44 : vector<1x8x8xf32> to vector<8x8xf32>
    %46 = arith.truncf %45 : vector<8x8xf32> to vector<8x8xbf16>
    %47 = vector.extract_strided_slice %17 {offsets = [0, 0], sizes = [8, 32], strides = [1, 1]} : vector<32x32xbf16> to vector<8x32xbf16>
    %cst_20 = arith.constant dense<0.000000e+00> : vector<8x32xf32>
    %48 = tpu.matmul %46, %47, %cst_20 {dimension_numbers = #tpu.dot_dimension_numbers<[1], [0], [0], [1], [0, 0, 1, 1], [], []>} : vector<8x8xbf16>, vector<8x32xbf16>, vector<8x32xf32> -> vector<8x32xf32>
    %49 = arith.addf %18, %48 : vector<8x32xf32>
    %50 = vector.extract_strided_slice %13 {offsets = [0, 8], sizes = [8, 8], strides = [1, 1]} : vector<8x32xf32> to vector<8x8xf32>
    %51 = vector.shape_cast %50 : vector<8x8xf32> to vector<1x8x8xf32>
    %52 = arith.truncf %51 : vector<1x8x8xf32> to vector<1x8x8xbf16>
    %53 = vector.extract_strided_slice %14 {offsets = [0, 8], sizes = [8, 8], strides = [1, 1]} : vector<8x32xf32> to vector<8x8xf32>
    %54 = vector.shape_cast %53 : vector<8x8xf32> to vector<1x8x8xf32>
    %55 = arith.truncf %54 : vector<1x8x8xf32> to vector<1x8x8xbf16>
    %56 = vector.extract_strided_slice %15 {offsets = [0, 8], sizes = [8, 8], strides = [1, 1]} : vector<8x32xf32> to vector<8x8xf32>
    %57 = vector.shape_cast %56 : vector<8x8xf32> to vector<1x8x8xf32>
    %58 = arith.truncf %57 : vector<1x8x8xf32> to vector<1x8x8xbf16>
    "tpu.trace_start"() <{level = 10 : i32, message = "bqd,bkd->bqk"}> : () -> ()
    %cst_21 = arith.constant dense<0.000000e+00> : vector<1x8x8xf32>
    %59 = tpu.matmul %52, %55, %cst_21 {dimension_numbers = #tpu.dot_dimension_numbers<[2], [2], [1], [1], [0, 0, 0, 1, 1, 1], [0], [0]>} : vector<1x8x8xbf16>, vector<1x8x8xbf16>, vector<1x8x8xf32> -> vector<1x8x8xf32>
    "tpu.trace_stop"() : () -> ()
    %cst_22 = arith.constant 0.353553385 : f32
    %60 = vector.broadcast %cst_22 : f32 to vector<1x8x8xf32>
    %61 = arith.mulf %59, %60 : vector<1x8x8xf32>
    %62 = vector.broadcast %4 : vector<1x1x8xf32> to vector<1x8x8xf32>
    %63 = arith.addf %61, %62 : vector<1x8x8xf32>
    %cst_23 = arith.constant dense<0xFF800000> : vector<1x8xf32>
    %64 = vector.multi_reduction <maximumf>, %63, %cst_23 [2] : vector<1x8x8xf32> to vector<1x8xf32>
    %65 = vector.shape_cast %64 : vector<1x8xf32> to vector<1x8x1xf32>
    %66 = vector.broadcast %65 : vector<1x8x1xf32> to vector<1x8x8xf32>
    %67 = arith.subf %63, %66 : vector<1x8x8xf32>
    %68 = math.exp %67 : vector<1x8x8xf32>
    %cst_24 = arith.constant dense<0.000000e+00> : vector<1x8xf32>
    %69 = vector.multi_reduction <add>, %68, %cst_24 [2] : vector<1x8x8xf32> to vector<1x8xf32>
    %70 = vector.shape_cast %69 : vector<1x8xf32> to vector<1x8x1xf32>
    %71 = tpu.reciprocal %70 {approx = true} : vector<1x8x1xf32> -> vector<1x8x1xf32>
    %72 = vector.broadcast %71 : vector<1x8x1xf32> to vector<1x8x8xf32>
    %73 = arith.mulf %68, %72 : vector<1x8x8xf32>
    %74 = arith.truncf %73 : vector<1x8x8xf32> to vector<1x8x8xbf16>
    "tpu.trace_start"() <{level = 10 : i32, message = "bqk,bkd->bqd"}> : () -> ()
    %cst_25 = arith.constant dense<0.000000e+00> : vector<1x8x8xf32>
    %75 = tpu.matmul %74, %58, %cst_25 {dimension_numbers = #tpu.dot_dimension_numbers<[2], [1], [1], [2], [0, 0, 0, 1, 1, 2], [0], [0]>} : vector<1x8x8xbf16>, vector<1x8x8xbf16>, vector<1x8x8xf32> -> vector<1x8x8xf32>
    "tpu.trace_stop"() : () -> ()
    %76 = vector.shape_cast %75 : vector<1x8x8xf32> to vector<8x8xf32>
    %77 = arith.truncf %76 : vector<8x8xf32> to vector<8x8xbf16>
    %78 = vector.extract_strided_slice %17 {offsets = [8, 0], sizes = [8, 32], strides = [1, 1]} : vector<32x32xbf16> to vector<8x32xbf16>
    %cst_26 = arith.constant dense<0.000000e+00> : vector<8x32xf32>
    %79 = tpu.matmul %77, %78, %cst_26 {dimension_numbers = #tpu.dot_dimension_numbers<[1], [0], [0], [1], [0, 0, 1, 1], [], []>} : vector<8x8xbf16>, vector<8x32xbf16>, vector<8x32xf32> -> vector<8x32xf32>
    %80 = arith.addf %49, %79 : vector<8x32xf32>
    %81 = vector.extract_strided_slice %13 {offsets = [0, 16], sizes = [8, 8], strides = [1, 1]} : vector<8x32xf32> to vector<8x8xf32>
    %82 = vector.shape_cast %81 : vector<8x8xf32> to vector<1x8x8xf32>
    %83 = arith.truncf %82 : vector<1x8x8xf32> to vector<1x8x8xbf16>
    %84 = vector.extract_strided_slice %14 {offsets = [0, 16], sizes = [8, 8], strides = [1, 1]} : vector<8x32xf32> to vector<8x8xf32>
    %85 = vector.shape_cast %84 : vector<8x8xf32> to vector<1x8x8xf32>
    %86 = arith.truncf %85 : vector<1x8x8xf32> to vector<1x8x8xbf16>
    %87 = vector.extract_strided_slice %15 {offsets = [0, 16], sizes = [8, 8], strides = [1, 1]} : vector<8x32xf32> to vector<8x8xf32>
    %88 = vector.shape_cast %87 : vector<8x8xf32> to vector<1x8x8xf32>
    %89 = arith.truncf %88 : vector<1x8x8xf32> to vector<1x8x8xbf16>
    "tpu.trace_start"() <{level = 10 : i32, message = "bqd,bkd->bqk"}> : () -> ()
    %cst_27 = arith.constant dense<0.000000e+00> : vector<1x8x8xf32>
    %90 = tpu.matmul %83, %86, %cst_27 {dimension_numbers = #tpu.dot_dimension_numbers<[2], [2], [1], [1], [0, 0, 0, 1, 1, 1], [0], [0]>} : vector<1x8x8xbf16>, vector<1x8x8xbf16>, vector<1x8x8xf32> -> vector<1x8x8xf32>
    "tpu.trace_stop"() : () -> ()
    %cst_28 = arith.constant 0.353553385 : f32
    %91 = vector.broadcast %cst_28 : f32 to vector<1x8x8xf32>
    %92 = arith.mulf %90, %91 : vector<1x8x8xf32>
    %93 = vector.broadcast %4 : vector<1x1x8xf32> to vector<1x8x8xf32>
    %94 = arith.addf %92, %93 : vector<1x8x8xf32>
    %cst_29 = arith.constant dense<0xFF800000> : vector<1x8xf32>
    %95 = vector.multi_reduction <maximumf>, %94, %cst_29 [2] : vector<1x8x8xf32> to vector<1x8xf32>
    %96 = vector.shape_cast %95 : vector<1x8xf32> to vector<1x8x1xf32>
    %97 = vector.broadcast %96 : vector<1x8x1xf32> to vector<1x8x8xf32>
    %98 = arith.subf %94, %97 : vector<1x8x8xf32>
    %99 = math.exp %98 : vector<1x8x8xf32>
    %cst_30 = arith.constant dense<0.000000e+00> : vector<1x8xf32>
    %100 = vector.multi_reduction <add>, %99, %cst_30 [2] : vector<1x8x8xf32> to vector<1x8xf32>
    %101 = vector.shape_cast %100 : vector<1x8xf32> to vector<1x8x1xf32>
    %102 = tpu.reciprocal %101 {approx = true} : vector<1x8x1xf32> -> vector<1x8x1xf32>
    %103 = vector.broadcast %102 : vector<1x8x1xf32> to vector<1x8x8xf32>
    %104 = arith.mulf %99, %103 : vector<1x8x8xf32>
    %105 = arith.truncf %104 : vector<1x8x8xf32> to vector<1x8x8xbf16>
    "tpu.trace_start"() <{level = 10 : i32, message = "bqk,bkd->bqd"}> : () -> ()
    %cst_31 = arith.constant dense<0.000000e+00> : vector<1x8x8xf32>
    %106 = tpu.matmul %105, %89, %cst_31 {dimension_numbers = #tpu.dot_dimension_numbers<[2], [1], [1], [2], [0, 0, 0, 1, 1, 2], [0], [0]>} : vector<1x8x8xbf16>, vector<1x8x8xbf16>, vector<1x8x8xf32> -> vector<1x8x8xf32>
    "tpu.trace_stop"() : () -> ()
    %107 = vector.shape_cast %106 : vector<1x8x8xf32> to vector<8x8xf32>
    %108 = arith.truncf %107 : vector<8x8xf32> to vector<8x8xbf16>
    %109 = vector.extract_strided_slice %17 {offsets = [16, 0], sizes = [8, 32], strides = [1, 1]} : vector<32x32xbf16> to vector<8x32xbf16>
    %cst_32 = arith.constant dense<0.000000e+00> : vector<8x32xf32>
    %110 = tpu.matmul %108, %109, %cst_32 {dimension_numbers = #tpu.dot_dimension_numbers<[1], [0], [0], [1], [0, 0, 1, 1], [], []>} : vector<8x8xbf16>, vector<8x32xbf16>, vector<8x32xf32> -> vector<8x32xf32>
    %111 = arith.addf %80, %110 : vector<8x32xf32>
    %112 = vector.extract_strided_slice %13 {offsets = [0, 24], sizes = [8, 8], strides = [1, 1]} : vector<8x32xf32> to vector<8x8xf32>
    %113 = vector.shape_cast %112 : vector<8x8xf32> to vector<1x8x8xf32>
    %114 = arith.truncf %113 : vector<1x8x8xf32> to vector<1x8x8xbf16>
    %115 = vector.extract_strided_slice %14 {offsets = [0, 24], sizes = [8, 8], strides = [1, 1]} : vector<8x32xf32> to vector<8x8xf32>
    %116 = vector.shape_cast %115 : vector<8x8xf32> to vector<1x8x8xf32>
    %117 = arith.truncf %116 : vector<1x8x8xf32> to vector<1x8x8xbf16>
    %118 = vector.extract_strided_slice %15 {offsets = [0, 24], sizes = [8, 8], strides = [1, 1]} : vector<8x32xf32> to vector<8x8xf32>
    %119 = vector.shape_cast %118 : vector<8x8xf32> to vector<1x8x8xf32>
    %120 = arith.truncf %119 : vector<1x8x8xf32> to vector<1x8x8xbf16>
    "tpu.trace_start"() <{level = 10 : i32, message = "bqd,bkd->bqk"}> : () -> ()
    %cst_33 = arith.constant dense<0.000000e+00> : vector<1x8x8xf32>
    %121 = tpu.matmul %114, %117, %cst_33 {dimension_numbers = #tpu.dot_dimension_numbers<[2], [2], [1], [1], [0, 0, 0, 1, 1, 1], [0], [0]>} : vector<1x8x8xbf16>, vector<1x8x8xbf16>, vector<1x8x8xf32> -> vector<1x8x8xf32>
    "tpu.trace_stop"() : () -> ()
    %cst_34 = arith.constant 0.353553385 : f32
    %122 = vector.broadcast %cst_34 : f32 to vector<1x8x8xf32>
    %123 = arith.mulf %121, %122 : vector<1x8x8xf32>
    %124 = vector.broadcast %4 : vector<1x1x8xf32> to vector<1x8x8xf32>
    %125 = arith.addf %123, %124 : vector<1x8x8xf32>
    %cst_35 = arith.constant dense<0xFF800000> : vector<1x8xf32>
    %126 = vector.multi_reduction <maximumf>, %125, %cst_35 [2] : vector<1x8x8xf32> to vector<1x8xf32>
    %127 = vector.shape_cast %126 : vector<1x8xf32> to vector<1x8x1xf32>
    %128 = vector.broadcast %127 : vector<1x8x1xf32> to vector<1x8x8xf32>
    %129 = arith.subf %125, %128 : vector<1x8x8xf32>
    %130 = math.exp %129 : vector<1x8x8xf32>
    %cst_36 = arith.constant dense<0.000000e+00> : vector<1x8xf32>
    %131 = vector.multi_reduction <add>, %130, %cst_36 [2] : vector<1x8x8xf32> to vector<1x8xf32>
    %132 = vector.shape_cast %131 : vector<1x8xf32> to vector<1x8x1xf32>
    %133 = tpu.reciprocal %132 {approx = true} : vector<1x8x1xf32> -> vector<1x8x1xf32>
    %134 = vector.broadcast %133 : vector<1x8x1xf32> to vector<1x8x8xf32>
    %135 = arith.mulf %130, %134 : vector<1x8x8xf32>
    %136 = arith.truncf %135 : vector<1x8x8xf32> to vector<1x8x8xbf16>
    "tpu.trace_start"() <{level = 10 : i32, message = "bqk,bkd->bqd"}> : () -> ()
    %cst_37 = arith.constant dense<0.000000e+00> : vector<1x8x8xf32>
    %137 = tpu.matmul %136, %120, %cst_37 {dimension_numbers = #tpu.dot_dimension_numbers<[2], [1], [1], [2], [0, 0, 0, 1, 1, 2], [0], [0]>} : vector<1x8x8xbf16>, vector<1x8x8xbf16>, vector<1x8x8xf32> -> vector<1x8x8xf32>
    "tpu.trace_stop"() : () -> ()
    %138 = vector.shape_cast %137 : vector<1x8x8xf32> to vector<8x8xf32>
    %139 = arith.truncf %138 : vector<8x8xf32> to vector<8x8xbf16>
    %140 = vector.extract_strided_slice %17 {offsets = [24, 0], sizes = [8, 32], strides = [1, 1]} : vector<32x32xbf16> to vector<8x32xbf16>
    %cst_38 = arith.constant dense<0.000000e+00> : vector<8x32xf32>
    %141 = tpu.matmul %139, %140, %cst_38 {dimension_numbers = #tpu.dot_dimension_numbers<[1], [0], [0], [1], [0, 0, 1, 1], [], []>} : vector<8x8xbf16>, vector<8x32xbf16>, vector<8x32xf32> -> vector<8x32xf32>
    %142 = arith.addf %111, %141 : vector<8x32xf32>
    %c0_39 = arith.constant 0 : index
    %c0_40 = arith.constant 0 : index
    %c0_41 = arith.constant 0 : index
    %143 = vector.load %arg9[%c0_39, %c0_40, %c0_41] : memref<1x1x32xf32, #tpu.memory_space<vmem>>, vector<1x1x32xf32>
    %144 = vector.shape_cast %143 : vector<1x1x32xf32> to vector<1x32xf32>
    %145 = vector.broadcast %144 : vector<1x32xf32> to vector<8x32xf32>
    %146 = arith.addf %142, %145 : vector<8x32xf32>
    %147 = arith.addf %146, %3 : vector<8x32xf32>
    %c0_42 = arith.constant 0 : index
    %c0_43 = arith.constant 0 : index
    %c0_44 = arith.constant 0 : index
    %148 = vector.load %arg10[%c0_42, %c0_43, %c0_44] : memref<1x1x32xf32, #tpu.memory_space<vmem>>, vector<1x1x32xf32>
    %149 = vector.shape_cast %148 : vector<1x1x32xf32> to vector<1x32xf32>
    %c0_45 = arith.constant 0 : index
    %c0_46 = arith.constant 0 : index
    %c0_47 = arith.constant 0 : index
    %150 = vector.load %arg11[%c0_45, %c0_46, %c0_47] : memref<1x1x32xf32, #tpu.memory_space<vmem>>, vector<1x1x32xf32>
    %151 = vector.shape_cast %150 : vector<1x1x32xf32> to vector<1x32xf32>
    %cst_48 = arith.constant dense<0.000000e+00> : vector<8xf32>
    %152 = vector.multi_reduction <add>, %147, %cst_48 [1] : vector<8x32xf32> to vector<8xf32>
    %153 = vector.shape_cast %152 : vector<8xf32> to vector<8x1xf32>
    %cst_49 = arith.constant 3.200000e+01 : f32
    %154 = vector.broadcast %cst_49 : f32 to vector<8x1xf32>
    %155 = arith.divf %153, %154 : vector<8x1xf32>
    %156 = vector.broadcast %155 : vector<8x1xf32> to vector<8x32xf32>
    %157 = arith.subf %147, %156 : vector<8x32xf32>
    %158 = arith.mulf %157, %157 : vector<8x32xf32>
    %cst_50 = arith.constant dense<0.000000e+00> : vector<8xf32>
    %159 = vector.multi_reduction <add>, %158, %cst_50 [1] : vector<8x32xf32> to vector<8xf32>
    %160 = vector.shape_cast %159 : vector<8xf32> to vector<8x1xf32>
    %cst_51 = arith.constant 3.200000e+01 : f32
    %161 = vector.broadcast %cst_51 : f32 to vector<8x1xf32>
    %162 = arith.divf %160, %161 : vector<8x1xf32>
    %cst_52 = arith.constant 9.99999974E-6 : f32
    %163 = vector.broadcast %cst_52 : f32 to vector<8x1xf32>
    %164 = arith.addf %162, %163 : vector<8x1xf32>
    %165 = math.rsqrt %164 : vector<8x1xf32>
    %166 = vector.broadcast %165 : vector<8x1xf32> to vector<8x32xf32>
    %167 = arith.mulf %157, %166 : vector<8x32xf32>
    %168 = vector.broadcast %149 : vector<1x32xf32> to vector<8x32xf32>
    %169 = arith.mulf %167, %168 : vector<8x32xf32>
    %170 = vector.broadcast %151 : vector<1x32xf32> to vector<8x32xf32>
    %171 = arith.addf %169, %170 : vector<8x32xf32>
    %172 = arith.truncf %171 : vector<8x32xf32> to vector<8x32xbf16>
    %c0_53 = arith.constant 0 : index
    %c0_54 = arith.constant 0 : index
    %c0_55 = arith.constant 0 : index
    %173 = vector.load %arg12[%c0_53, %c0_54, %c0_55] : memref<1x32x64xbf16, #tpu.memory_space<vmem>>, vector<1x32x64xbf16>
    %174 = vector.shape_cast %173 : vector<1x32x64xbf16> to vector<32x64xbf16>
    %cst_56 = arith.constant dense<0.000000e+00> : vector<8x64xf32>
    %175 = tpu.matmul %172, %174, %cst_56 {dimension_numbers = #tpu.dot_dimension_numbers<[1], [0], [0], [1], [0, 0, 1, 1], [], []>} : vector<8x32xbf16>, vector<32x64xbf16>, vector<8x64xf32> -> vector<8x64xf32>
    %c0_57 = arith.constant 0 : index
    %c0_58 = arith.constant 0 : index
    %c0_59 = arith.constant 0 : index
    %176 = vector.load %arg13[%c0_57, %c0_58, %c0_59] : memref<1x1x64xf32, #tpu.memory_space<vmem>>, vector<1x1x64xf32>
    %177 = vector.shape_cast %176 : vector<1x1x64xf32> to vector<1x64xf32>
    %178 = vector.broadcast %177 : vector<1x64xf32> to vector<8x64xf32>
    %179 = arith.addf %175, %178 : vector<8x64xf32>
    %cst_60 = arith.constant 0.000000e+00 : f32
    %180 = vector.broadcast %cst_60 : f32 to vector<8x64xf32>
    %181 = arith.maximumf %179, %180 : vector<8x64xf32>
    %182 = arith.truncf %181 : vector<8x64xf32> to vector<8x64xbf16>
    %c0_61 = arith.constant 0 : index
    %c0_62 = arith.constant 0 : index
    %c0_63 = arith.constant 0 : index
    %183 = vector.load %arg14[%c0_61, %c0_62, %c0_63] : memref<1x64x32xbf16, #tpu.memory_space<vmem>>, vector<1x64x32xbf16>
    %184 = vector.shape_cast %183 : vector<1x64x32xbf16> to vector<64x32xbf16>
    %cst_64 = arith.constant dense<0.000000e+00> : vector<8x32xf32>
    %185 = tpu.matmul %182, %184, %cst_64 {dimension_numbers = #tpu.dot_dimension_numbers<[1], [0], [0], [1], [0, 0, 1, 1], [], []>} : vector<8x64xbf16>, vector<64x32xbf16>, vector<8x32xf32> -> vector<8x32xf32>
    %c0_65 = arith.constant 0 : index
    %c0_66 = arith.constant 0 : index
    %c0_67 = arith.constant 0 : index
    %186 = vector.load %arg15[%c0_65, %c0_66, %c0_67] : memref<1x1x32xf32, #tpu.memory_space<vmem>>, vector<1x1x32xf32>
    %187 = vector.shape_cast %186 : vector<1x1x32xf32> to vector<1x32xf32>
    %188 = vector.broadcast %187 : vector<1x32xf32> to vector<8x32xf32>
    %189 = arith.addf %185, %188 : vector<8x32xf32>
    %190 = arith.addf %189, %171 : vector<8x32xf32>
    %c0_68 = arith.constant 0 : index
    %c0_69 = arith.constant 0 : index
    %c0_70 = arith.constant 0 : index
    %191 = vector.load %arg16[%c0_68, %c0_69, %c0_70] : memref<1x1x32xf32, #tpu.memory_space<vmem>>, vector<1x1x32xf32>
    %192 = vector.shape_cast %191 : vector<1x1x32xf32> to vector<1x32xf32>
    %c0_71 = arith.constant 0 : index
    %c0_72 = arith.constant 0 : index
    %c0_73 = arith.constant 0 : index
    %193 = vector.load %arg17[%c0_71, %c0_72, %c0_73] : memref<1x1x32xf32, #tpu.memory_space<vmem>>, vector<1x1x32xf32>
    %194 = vector.shape_cast %193 : vector<1x1x32xf32> to vector<1x32xf32>
    %cst_74 = arith.constant dense<0.000000e+00> : vector<8xf32>
    %195 = vector.multi_reduction <add>, %190, %cst_74 [1] : vector<8x32xf32> to vector<8xf32>
    %196 = vector.shape_cast %195 : vector<8xf32> to vector<8x1xf32>
    %cst_75 = arith.constant 3.200000e+01 : f32
    %197 = vector.broadcast %cst_75 : f32 to vector<8x1xf32>
    %198 = arith.divf %196, %197 : vector<8x1xf32>
    %199 = vector.broadcast %198 : vector<8x1xf32> to vector<8x32xf32>
    %200 = arith.subf %190, %199 : vector<8x32xf32>
    %201 = arith.mulf %200, %200 : vector<8x32xf32>
    %cst_76 = arith.constant dense<0.000000e+00> : vector<8xf32>
    %202 = vector.multi_reduction <add>, %201, %cst_76 [1] : vector<8x32xf32> to vector<8xf32>
    %203 = vector.shape_cast %202 : vector<8xf32> to vector<8x1xf32>
    %cst_77 = arith.constant 3.200000e+01 : f32
    %204 = vector.broadcast %cst_77 : f32 to vector<8x1xf32>
    %205 = arith.divf %203, %204 : vector<8x1xf32>
    %cst_78 = arith.constant 9.99999974E-6 : f32
    %206 = vector.broadcast %cst_78 : f32 to vector<8x1xf32>
    %207 = arith.addf %205, %206 : vector<8x1xf32>
    %208 = math.rsqrt %207 : vector<8x1xf32>
    %209 = vector.broadcast %208 : vector<8x1xf32> to vector<8x32xf32>
    %210 = arith.mulf %200, %209 : vector<8x32xf32>
    %211 = vector.broadcast %192 : vector<1x32xf32> to vector<8x32xf32>
    %212 = arith.mulf %210, %211 : vector<8x32xf32>
    %213 = vector.broadcast %194 : vector<1x32xf32> to vector<8x32xf32>
    %214 = arith.addf %212, %213 : vector<8x32xf32>
    %c0_79 = arith.constant 0 : index
    %c0_80 = arith.constant 0 : index
    %215 = vector.load %arg19[%c0_79, %c0_80] : memref<8x32xf32, #tpu.memory_space<vmem>>, vector<8x32xf32>
    tpu.vector_store %arg19[%c0_79, %c0_80], %214 {strides = array<i32>} : memref<8x32xf32, #tpu.memory_space<vmem>>, vector<8x32xf32>,
    %c1_i32 = arith.constant 1 : i32
    %216 = arith.cmpi eq, %arg1, %c1_i32 : i32
    %217 = arith.extui %216 : i1 to i32
    %c0_i32_81 = arith.constant 0 : i32
    %218 = arith.cmpi ne, %217, %c0_i32_81 : i32
    scf.if %218 {
      %219 = vector.shape_cast %214 : vector<8x32xf32> to vector<1x8x32xf32>
      %c0_82 = arith.constant 0 : index
      %c0_83 = arith.constant 0 : index
      %c0_84 = arith.constant 0 : index
      %220 = vector.load %arg18[%c0_82, %c0_83, %c0_84] : memref<1x8x32xf32, #tpu.memory_space<vmem>>, vector<1x8x32xf32>
      tpu.vector_store %arg18[%c0_82, %c0_83, %c0_84], %219 {strides = array<i32>} : memref<1x8x32xf32, #tpu.memory_space<vmem>>, vector<1x8x32xf32>,
    } else {
    }
    return
  }
  func.func @transform_0(%arg0: i32, %arg1: i32) -> (i32, i32, i32) {
    %c0_i32 = arith.constant 0 : i32
    %c0_i32_0 = arith.constant 0 : i32
    %c0_i32_1 = arith.constant 0 : i32
    return %arg0, %c0_i32, %c0_i32_0 : i32, i32, i32
  }
  func.func @transform_1(%arg0: i32, %arg1: i32) -> (i32, i32, i32) {
    %c0_i32 = arith.constant 0 : i32
    %c0_i32_0 = arith.constant 0 : i32
    %c0_i32_1 = arith.constant 0 : i32
    return %arg0, %c0_i32, %c0_i32_0 : i32, i32, i32
  }
  func.func @transform_2(%arg0: i32, %arg1: i32) -> (i32, i32) {
    %c0_i32 = arith.constant 0 : i32
    %c0_i32_0 = arith.constant 0 : i32
    %c0_i32_1 = arith.constant 0 : i32
    return %c0_i32, %c0_i32_0 : i32, i32
  }
  func.func @transform_3(%arg0: i32, %arg1: i32) -> (i32, i32) {
    %c0_i32 = arith.constant 0 : i32
    %c0_i32_0 = arith.constant 0 : i32
    %c0_i32_1 = arith.constant 0 : i32
    return %c0_i32, %c0_i32_0 : i32, i32
  }
  func.func @transform_4(%arg0: i32, %arg1: i32) -> (i32, i32, i32) {
    %c0_i32 = arith.constant 0 : i32
    %c0_i32_0 = arith.constant 0 : i32
    %c0_i32_1 = arith.constant 0 : i32
    return %arg1, %c0_i32, %c0_i32_0 : i32, i32, i32
  }
  func.func @transform_5(%arg0: i32, %arg1: i32) -> (i32, i32, i32) {
    %c0_i32 = arith.constant 0 : i32
    %c0_i32_0 = arith.constant 0 : i32
    %c0_i32_1 = arith.constant 0 : i32
    return %arg1, %c0_i32, %c0_i32_0 : i32, i32, i32
  }
  func.func @transform_6(%arg0: i32, %arg1: i32) -> (i32, i32, i32) {
    %c0_i32 = arith.constant 0 : i32
    %c0_i32_0 = arith.constant 0 : i32
    %c0_i32_1 = arith.constant 0 : i32
    return %arg1, %c0_i32, %c0_i32_0 : i32, i32, i32
  }
  func.func @transform_7(%arg0: i32, %arg1: i32) -> (i32, i32, i32) {
    %c0_i32 = arith.constant 0 : i32
    %c0_i32_0 = arith.constant 0 : i32
    %c0_i32_1 = arith.constant 0 : i32
    return %arg1, %c0_i32, %c0_i32_0 : i32, i32, i32
  }
  func.func @transform_8(%arg0: i32, %arg1: i32) -> (i32, i32, i32) {
    %c0_i32 = arith.constant 0 : i32
    %c0_i32_0 = arith.constant 0 : i32
    %c0_i32_1 = arith.constant 0 : i32
    return %arg1, %c0_i32, %c0_i32_0 : i32, i32, i32
  }
  func.func @transform_9(%arg0: i32, %arg1: i32) -> (i32, i32, i32) {
    %c0_i32 = arith.constant 0 : i32
    %c0_i32_0 = arith.constant 0 : i32
    %c0_i32_1 = arith.constant 0 : i32
    return %arg1, %c0_i32, %c0_i32_0 : i32, i32, i32
  }
  func.func @transform_10(%arg0: i32, %arg1: i32) -> (i32, i32, i32) {
    %c0_i32 = arith.constant 0 : i32
    %c0_i32_0 = arith.constant 0 : i32
    %c0_i32_1 = arith.constant 0 : i32
    return %arg1, %c0_i32, %c0_i32_0 : i32, i32, i32
  }
  func.func @transform_11(%arg0: i32, %arg1: i32) -> (i32, i32, i32) {
    %c0_i32 = arith.constant 0 : i32
    %c0_i32_0 = arith.constant 0 : i32
    %c0_i32_1 = arith.constant 0 : i32
    return %arg1, %c0_i32, %c0_i32_0 : i32, i32, i32
  }
  func.func @transform_12(%arg0: i32, %arg1: i32) -> (i32, i32, i32) {
    %c0_i32 = arith.constant 0 : i32
    %c0_i32_0 = arith.constant 0 : i32
    %c0_i32_1 = arith.constant 0 : i32
    return %arg1, %c0_i32, %c0_i32_0 : i32, i32, i32
  }
  func.func @transform_13(%arg0: i32, %arg1: i32) -> (i32, i32, i32) {
    %c0_i32 = arith.constant 0 : i32
    %c0_i32_0 = arith.constant 0 : i32
    %c0_i32_1 = arith.constant 0 : i32
    return %arg1, %c0_i32, %c0_i32_0 : i32, i32, i32
  }
  func.func @transform_14(%arg0: i32, %arg1: i32) -> (i32, i32, i32) {
    %c0_i32 = arith.constant 0 : i32
    %c0_i32_0 = arith.constant 0 : i32
    %c0_i32_1 = arith.constant 0 : i32
    return %arg1, %c0_i32, %c0_i32_0 : i32, i32, i32
  }
  func.func @transform_15(%arg0: i32, %arg1: i32) -> (i32, i32, i32) {
    %c0_i32 = arith.constant 0 : i32
    %c0_i32_0 = arith.constant 0 : i32
    %c0_i32_1 = arith.constant 0 : i32
    return %arg1, %c0_i32, %c0_i32_0 : i32, i32, i32
  }
  func.func @transform_16(%arg0: i32, %arg1: i32) -> (i32, i32, i32) {
    %c0_i32 = arith.constant 0 : i32
    %c0_i32_0 = arith.constant 0 : i32
    %c0_i32_1 = arith.constant 0 : i32
    return %arg0, %c0_i32, %c0_i32_0 : i32, i32, i32
  }
}

</mosaic_0001>

<bundles_post_ra>
// kernel: tpu_custom_call.1
= control target key start
LH: loop header
LB: loop body
LE: loop exit
PB: predicated region body
PF: predicated region fallthrough
CT: control target
= control target key end

     0   :  { %s2783_s0 = inlined_call_operand.hbm [shape: bf16[2,8,32], index: 0, kind: input, shape index: {}]   ;;  %s2784_s1 = inlined_call_operand.hbm [shape: f32[2,1,8], index: 1, kind: input, shape index: {}]   ;;  %s2785_s2 = inlined_call_operand.vmem [shape: f32[1,32], index: 2, kind: input, shape index: {}]   ;;  %s2786_s3 = inlined_call_operand.hbm [shape: f32[1,32], index: 3, kind: input, shape index: {}]   ;;  %s2787_s4 = inlined_call_operand.vmem [shape: bf16[2,32,96], index: 4, kind: input, shape index: {}]   ;;  %s2788_s5 = inlined_call_operand.vmem [shape: f32[2,1,96], index: 5, kind: input, shape index: {}]   ;;  %s2789_s6 = inlined_call_operand.vmem [shape: bf16[2,32,32], index: 6, kind: input, shape index: {}]   ;;  %s2790_s7 = inlined_call_operand.vmem [shape: f32[2,1,32], index: 7, kind: input, shape index: {}]   ;;  %s2791_s8 = inlined_call_operand.vmem [shape: f32[2,1,32], index: 8, kind: input, shape index: {}]   ;;  %s2792_s9 = inlined_call_operand.hbm [shape: f32[2,1,32], index: 9, kind: input, shape index: {}]   ;;  %s2793_s10 = inlined_call_operand.vmem [shape: bf16[2,32,64], index: 10, kind: input, shape index: {}]   ;;  %s2794_s11 = inlined_call_operand.vmem [shape: f32[2,1,64], index: 11, kind: input, shape index: {}]   ;;  %s2795_s12 = inlined_call_operand.vmem [shape: bf16[2,64,32], index: 12, kind: input, shape index: {}]   ;;  %s2796_s13 = inlined_call_operand.vmem [shape: f32[2,1,32], index: 13, kind: input, shape index: {}]   ;;  %s2797_s14 = inlined_call_operand.vmem [shape: f32[2,1,32], index: 14, kind: input, shape index: {}]   ;;  %s2798_s15 = inlined_call_operand.hbm [shape: f32[2,1,32], index: 15, kind: input, shape index: {}]   ;;  %s2799_s16 = inlined_call_operand.hbm [shape: f32[2,8,32], index: 16, kind: output, shape index: {}]  }
   0x1   :  { %2819 = sst [smem:[#allocation34_spill]] %s2783_s0 }
   0x2   :  { %2820 = sst [smem:[#allocation35_spill]] %s2784_s1 }
   0x3   :  { %2821 = sst [smem:[#allocation36_spill]] %s2785_s2 }
   0x4   :  { %2822 = sst [smem:[#allocation37_spill]] %s2786_s3 }
   0x5   :  { %2823 = sst [smem:[#allocation38_spill]] %s2787_s4 }
   0x6   :  { %2824 = sst [smem:[#allocation39_spill]] %s2788_s5 }
   0x7   :  { %2825 = sst [smem:[#allocation40_spill]] %s2789_s6 }
   0x8   :  { %2826 = sst [smem:[#allocation41_spill]] %s2790_s7 }
   0x9   :  { %2827 = sst [smem:[#allocation42_spill]] %s2791_s8 }
   0xa   :  { %2828 = sst [smem:[#allocation43_spill]] %s2792_s9 }
   0xb   :  { %2829 = sst [smem:[#allocation44_spill]] %s2793_s10 }
   0xc   :  { %2830 = sst [smem:[#allocation45_spill]] %s2794_s11 }
   0xd   :  { %2831 = sst [smem:[#allocation46_spill]] %s2795_s12 }
   0xe   :  { %2832 = sst [smem:[#allocation47_spill]] %s2796_s13 }
   0xf   :  { %2833 = sst [smem:[#allocation48_spill]] %s2797_s14 }
  0x10   :  { %2834 = sst [smem:[#allocation49_spill]] %s2798_s15 }
  0x11   :  { %2835 = sst [smem:[#allocation50_spill]] %s2799_s16 }
  0x12   :  { %21 = vsyncpa [#allocation4], 0 }
  0x13   :  { %23 = vsyncpa [#allocation4 + $0x1], 0 }
  0x14   :  { %24 = vsyncpa [#allocation7], 0 }
  0x15   :  { %26 = vsyncpa [#allocation7 + $0x1], 0 }
  0x16   :  { %27 = vsyncpa [#allocation10], 0 }
  0x17   :  { %29 = vsyncpa [#allocation10 + $0x1], 0 }
  0x18   :  { %30 = vsyncpa [#allocation5], 0 }
  0x19   :  { %32 = vsyncpa [#allocation5 + $0x1], 0  ;;  %s2329_s21 = smov 0   ;;  %s2331_s22 = smov 0  }
  0x1a   :  { %s2333_s23 = smov 0   ;;  %s2335_s24 = smov 0  }
  0x1b   :  { %s2337_s25 = smov 0   ;;  %s2339_s26 = smov 0  }
  0x1c   :  { %s2341_s27 = smov 0   ;;  %s2343_s28 = smov 0  }
  0x1d   :  { %s2345_s29 = smov 0   ;;  %s2347_s30 = smov 0  }
  0x1e   :  { %s2349_s0 = smov 0  }
  0x1f LB: > { %2836 = sst [smem:[#allocation18_spill]] %s2192_s22  ;;  %s2385_s17 = sadd.s32 4294967295, %s2228_s0   ;;  %s2228_s0 = sphi %s2349_s0, %s38_s0   ;;  %s2224_s30 = sphi %s2347_s30, %s2906_s30   ;;  %s2220_s29 = sphi %s2345_s29, %s2905_s29   ;;  %s2216_s28 = sphi %s2343_s28, %s2904_s28   ;;  %s2212_s27 = sphi %s2341_s27, %s2903_s27   ;;  %s2208_s26 = sphi %s2339_s26, %s2902_s26   ;;  %s2204_s25 = sphi %s2337_s25, %s2901_s25   ;;  %s2200_s24 = sphi %s2335_s24, %s2900_s24   ;;  %s2196_s23 = sphi %s2333_s23, %s2899_s23   ;;  %s2192_s22 = sphi %s2331_s22, %s2898_s22   ;;  %s2188_s21 = sphi %s2329_s21, %s2897_s21  }
  0x20   : > { %2837 = sst [smem:[#allocation19_spill]] %s2196_s23  ;;  %p1684_p0 = scmp.ge.s32.totalorder %s2228_s0, 1 }
  0x21   : > { %2838 = sst [smem:[#allocation20_spill]] %s2200_s24  ;;  %p71_p1 = scmp.eq.s32.totalorder %s2385_s17, 0 }
  0x22   : > { %2839 = sst [smem:[#allocation21_spill]] %s2204_s25  ;;  %p474_p2 = scmp.eq.s32.totalorder %s2385_s17, 3 }
  0x23   : > { %2840 = sst [smem:[#allocation22_spill]] %s2208_s26  ;;  %p487_p3 = scmp.lt.s32.totalorder %s2228_s0, 5 }
  0x24   : > { %2841 = sst [smem:[#allocation23_spill]] %s2212_s27  ;;  %s47_s18 = sadd.s32 1, %s2220_s29 }
  0x25   : > { %2842 = sst [smem:[#allocation24_spill]] %s2216_s28  ;;  %p2394_p4 = pnand %p1684_p0, %p487_p3 }
  0x26   : > { %2843 = sst [smem:[#allocation25_spill]] %s2220_s29  ;;  %s2230_s28 = smov [#allocation8]  }
  0x27   : > { %2844 = sst [smem:[#allocation26_spill]] %s2224_s30  ;;  %s504_s2 = sshll.u32 %s2230_s28, 4  ;;  %s505_s2 = int_to_ptr.vmem [resolvable:$true] %s504_s2 }
  0x28   : > { %2845 = sst [smem:[#allocation27_spill]] %s2228_s0  ;;  %p1780_p5 = pneg %p2394_p4 }
  0x29   : > { %s2846_s3 = sld [smem:[#allocation37_spill]]  ;;  %p65_p7 = scmp.eq.s32.totalorder %s2228_s0, 0 }
  0x2a   : > { %p1781_p6 = pnand %p1780_p5, %p71_p1  ;;  %p2404_p8 = scmp.ge.s32.totalorder %s47_s18, 2 }
  0x2b   : > { %p288_p9 = scmp.ne.s32.totalorder %s2196_s23, %s2192_s22  ;;  %p294_p10 = scmp.ne.s32.totalorder %s2192_s22, %s2188_s21 }
  0x2c   : > { %s2908_s18 = smov (%p2404_p8, %s47_s18), 0  ;;  %p2803_p13 = scmp.lt.s32.totalorder %s2228_s0, 4 }
  0x2d   : > { %2849 = sst [smem:[#allocation28_spill]] %s2908_s18  ;;  %p2419_p11 = por %p288_p9, %p65_p7 }
  0x2e   : > { %p2425_p12 = por %p294_p10, %p71_p1  ;;  %s2804_s21 = sand.u32 1, %s2228_s0  }
  0x2f   : > { %s502_s20 = sshll.u32 %s2846_s3, 4  ;;  %s281_s3 = sadd.s32 1, %s2196_s23  ;;  %s503_s20 = int_to_ptr.hbm [resolvable:$true] %s502_s20 }
  0x30   : > { %1783 = dma.hbm_to_vmem [thread:$0]  (!%p1781_p6), %s503_s20, 16, %s505_s2, [#allocation7]  }
  0x31   : > { %s278_s20 = ssub.s32 %s2220_s29, %s2908_s18  ;;  %s2802_s12 = sand.u32 1, %s2196_s23  }
  0x32   : > { %p279_p0 = scmp.eq.s32.totalorder %s278_s20, 0  ;;  %s2853_s9 = sld [smem:[#allocation43_spill]] }
  0x33   : > { %s588_s8 = scalar_lea.vmem [#allocation9], %s2802_s12  ;;  %p2447_p3 = pnand %p2803_p13, %p2419_p11 }
  0x34   : > { %s2434_s14 = scalar_select %p279_p0, %s2196_s23, %s281_s3  }
  0x35   : > { %s595_s20 = sshll.u32 %s588_s8, 4  ;;  %s2453_s11 = scalar_lea.sflag [#allocation10], %s2804_s21  ;;  %s596_s20 = int_to_ptr.vmem [resolvable:$true] %s595_s20 }
  0x36   : > { %2852 = sst [smem:[#allocation29_spill]] %s2434_s14  ;;  %s50_s13 = sadd.s32 1, %s2224_s30 }
  0x37   : > { %s2910_s13 = smov (!%p2404_p8, %s50_s13), %s2224_s30  ;;  %s57_s8 = sadd.s32 1, %s2208_s26 }
  0x38   : > { %s591_s10 = scalar_lea.hbm %s2853_s9, %s2220_s29  ;;  %p64_p5 = scmp.ne.s32.totalorder %s2208_s26, %s2204_s25 }
  0x39   : > { %s593_s18 = sshll.u32 %s591_s10, 4  ;;  %s1683_s10 = sadd.s32 4294967294, %s2228_s0   ;;  %s594_s18 = int_to_ptr.hbm [resolvable:$true] %s593_s18 }
  0x3a   : > { %1793 = dma.hbm_to_vmem [thread:$0]  (!%p2447_p3), %s594_s18, 16, %s596_s20, %s2453_s11  }
  0x3b   : > { %p52_p6 = scmp.ge.s32.totalorder %s2910_s13, 2  ;;  %p70_p9 = scmp.ne.s32.totalorder %s2204_s25, %s2200_s24 }
  0x3c   : > { %p2470_p10 = por %p65_p7, %p64_p5  ;;  %p2476_p11 = por %p474_p2, %p64_p5 }
  0x3d   : > { %s2912_s13 = smov (%p52_p6, %s2910_s13), 0  ;;  %p2484_p8 = por %p71_p1, %p70_p9 }
  0x3e   : > { %s2856_s12 = scalar_select %p2476_p11, 1, 0 }
  0x3f   : > { %2858 = sst [smem:[#allocation31_spill]] %s2912_s13  ;;  %p480_p7 = scmp.eq.s32.totalorder %s1683_s10, 3 }
  0x40   : > { %2857 = sst [smem:[#allocation30_spill]] %s2856_s12  ;;  %s54_s19 = ssub.s32 %s2224_s30, %s2912_s13 }
  0x41   : > { %s515_s20 = sand.u32 1, %s2208_s26   ;;  %p55_p0 = scmp.eq.s32.totalorder %s54_s19, 0 }
  0x42   : > { %p2491_p13 = por %p480_p7, %p70_p9  ;;  %s1687_s9 = sshll.u32 %s515_s20, 2 }
  0x43   : > { %s2496_s14 = scalar_select %p55_p0, %s2208_s26, %s57_s8  }
  0x44   : > { %s2860_s21 = scalar_select %p2491_p13, 1, 0 }
  0x45   : > { %2862 = sst [smem:[#allocation33_spill]] %s2496_s14  ;;  %s1688_s24 = sshll.u32 %s2224_s30, 2 }
  0x46   : > { %2861 = sst [smem:[#allocation32_spill]] %s2860_s21  ;;  %s519_s5 = scalar_lea.vmem [#allocation3], %s1687_s9 }
  0x47   : > { %s2863_s6 = sld [smem:[#allocation34_spill]]  ;;  %s527_s27 = sshll.u32 %s519_s5, 4  ;;  %s528_s27 = int_to_ptr.vmem [resolvable:$true] %s527_s27 }
  0x48   : > { %p2864_p2 = scmp.lt.s32.totalorder %s2228_s0, 4  ;;  %s2865_s1 = sld [smem:[#allocation35_spill]] }
  0x49   : > { %s516_s7 = scalar_lea.sflag [#allocation4], %s515_s20  ;;  %s2866_s15 = sld [smem:[#allocation49_spill]] }
  0x4a   : > { %p1785_p5 = pnand %p2864_p2, %p2470_p10  ;;  %s2868_s21 = sand.u32 1, %s2196_s23  }
  0x4b   : > { %s639_s13 = scalar_lea.vmem [#allocation11], %s2868_s21 }
  0x4c   : > { %s646_s19 = sshll.u32 %s639_s13, 4  ;;  %s647_s19 = int_to_ptr.vmem [resolvable:$true] %s646_s19 }
  0x4d   : > { %s523_s4 = scalar_lea.hbm %s2863_s6, %s1688_s24  ;;  %s537_s6 = scalar_lea.vmem [#allocation6], %s515_s20 }
  0x4e   : > { %s525_s10 = sshll.u32 %s523_s4, 4  ;;  %s540_s8 = scalar_lea.hbm %s2865_s1, %s2224_s30  ;;  %s526_s10 = int_to_ptr.hbm [resolvable:$true] %s525_s10 }
  0x4f   : > { %s542_s14 = sshll.u32 %s540_s8, 4  ;;  %s544_s9 = sshll.u32 %s537_s6, 4  ;;  %s543_s14 = int_to_ptr.hbm [resolvable:$true] %s542_s14  ;;  %s545_s9 = int_to_ptr.vmem [resolvable:$true] %s544_s9 }
  0x50   : > { %1787 = dma.hbm_to_vmem [thread:$0]  (!%p1785_p5), %s526_s10, 64, %s528_s27, %s516_s7  }
  0x51   : > { %s642_s12 = scalar_lea.hbm %s2866_s15, %s2220_s29  ;;  %s2867_s24 = sand.u32 1, %s2228_s0  }
  0x52   : > { %s535_s2 = scalar_lea.sflag [#allocation7], %s2867_s24  ;;  %s644_s26 = sshll.u32 %s642_s12, 4  ;;  %s645_s26 = int_to_ptr.hbm [resolvable:$true] %s644_s26 }
  0x53   : > { %1790 = dma.hbm_to_vmem [thread:$0]  (!%p1785_p5), %s543_s14, 16, %s545_s9, %s535_s2  }
  0x54   : > { %1796 = dma.hbm_to_vmem [thread:$0]  (!%p2447_p3), %s645_s26, 16, %s647_s19, %s2453_s11  }
  0x55   : > { %655 = sbr.rel (%p2394_p4) target bundleno = 2691 (0xa83), region = 84  ;;  %s2524_s27 = sand.u32 (!%p2394_p4), 1, %s2204_s25  }
  0x56   : > { %s1690_s20 = sshll.u32 (!%p2394_p4), %s2524_s27, 2  ;;  %s658_s10 = scalar_lea.sflag (!%p2394_p4), [#allocation4], %s2524_s27 }
  0x57   : > { %s2528_s14 = scalar_lea.vmem (!%p2394_p4), [#allocation3], %s1690_s20 }
  0x5a   : > { %2167 = dma.done.wait (%p2484_p8), %s658_s10, 64  }
  0x5b   : > { %2169 = vsyncadd (%p2484_p8), %s658_s10, 4294967232  ;;  %s667_s16 = sand.u32 1, %s2385_s17  }
  0x5c   : > { %s668_s26 = scalar_lea.sflag [#allocation7], %s667_s16 }
  0x5d   : > { %2171 = dma.done.wait (%p2484_p8), %s668_s26, 16  }
  0x5e   : > { %2173 = vsyncadd (%p2484_p8), %s668_s26, 4294967280 }
  0x5f   : > { %2175 = dma.done.wait (%p71_p1), [#allocation7], 16  }
  0x60   : > { %2177 = vsyncadd (%p71_p1), [#allocation7], 4294967280  ;;  %s683_s3 = sand.u32 1, %s2192_s22   ;;  %s682_s11 = scalar_lea.sflag [#allocation10], %s667_s16 }
  0x61   : > { %s2545_s8 = scalar_lea.vmem [#allocation9], %s683_s3 }
  0x62   : > { %2179 = dma.done.wait (%p2425_p12), %s682_s11, 32  }
  0x63   : > { %2181 = vsyncadd (%p2425_p12), %s682_s11, 4294967264  ;;  %s2869_s18 = sld [smem:[#allocation23_spill]]  ;;  %s1692_s7 = sshll.u32 %s2524_s27, 3 }
  0x64   : > { %s2871_s2 = sld [smem:[#allocation38_spill]]  ;;  %s2604_s4 = scalar_lea.vmem [#allocation12], %s1692_s7 }
  0x65   : > { %s2872_s10 = sld [smem:[#allocation40_spill]] }
  0x66   : > { %s2874_s29 = sld [smem:[#allocation42_spill]] }
  0x67   : > { %s2875_s28 = sld [smem:[#allocation44_spill]] }
  0x68   : > { %s2877_s22 = sld [smem:[#allocation47_spill]] }
  0x69   : > { %p793_p4 = scmp.lt.s32.totalorder %s2869_s18, 1  ;;  %s2878_s11 = sld [smem:[#allocation46_spill]] }
  0x6a   : > { %s2879_s30 = sld [smem:[#allocation48_spill]]  ;;  %p1701_p1 = scmp.ne.s32.totalorder %s2869_s18, 0 }
  0x6b   : > { %s2554_s6 = scalar_select %p793_p4, %s2869_s18, 1 }
  0x6d   : > { %s1754_s17 = sshll.u32 %s2554_s6, 4  ;;  %s811_s25 = scalar_lea.vmem %s2874_s29, %s2554_s6 }
  0x6e   : > { %s2564_s13 = scalar_lea.vmem %s2871_s2, %s1754_s17  ;;  %s2569_s16 = scalar_lea.vmem %s2872_s10, %s1754_s17 }
  0x6f   : > { %s2582_s5 = scalar_lea.vmem %s2875_s28, %s1754_s17  ;;  %s2876_s2 = sld [smem:[#allocation45_spill]] }
  0x70   : > { %s1757_s19 = sshll.u32 %s2554_s6, 5  ;;  %s827_s0 = scalar_lea.vmem %s2877_s22, %s2554_s6 }
  0x71   : > { %s2596_s1 = scalar_lea.vmem %s2878_s11, %s1757_s19  ;;  %s830_s9 = scalar_lea.vmem %s2879_s30, %s2554_s6 }
  0x72   : > { %s2602_s17 = scalar_lea.vmem [#allocation11], %s683_s3  ;;  %835 = sbr.rel (%p1701_p1) target bundleno = 391 (0x187), region = 108 }
  0x73   : > { %s2880_s3 = sld [smem:[#allocation36_spill]] (!%p1701_p1) }
  0x75   : > { %s819_s23 = scalar_lea.vmem %s2876_s2, %s2554_s6 }
  0x77   : > { %v836_v0 = vld [vmem:[%s2528_s14] sm:$0xf]  ;;  %vm840_vm0 = vcmask 261120   ;;  %v2231_v3 = vmov 32.0   ;;  %v1908_v26 = vld [vmem:[#allocation8] ss:$0 sm:$0xff] }
  0x78   : > { %v837_v1 = vunpack.c.l.bf16 %v836_v0  ;;  %1909 = vrcp.f32 %v2231_v3 }
  0x79   : > { %v1907_v24 = vld [vmem:[%s2880_s3] ss:$0 sm:$0xff] }
  0x7a   : > { %v841_v2 = vsel %vm840_vm0, %v837_v1, 0.0 }
  0x7b   : > { %842 = vadd.xlane.f32.xlu0 %v841_v2 }
  0x7e   : > { %v1910_v4 = vpop.eup %1909 }
  0x7f   : > { %v845_v5 = vmul.f32 32.0, %v1910_v4  ;;  %vm849_vm1 = vweird.f32 %v1910_v4 }
  0x81   : > { %v846_v6 = vsub.f32 1.0, %v845_v5 }
  0x83   : > { %v847_v7 = vmul.f32 %v1910_v4, %v846_v6 }
  0x85   : > { %v848_v8 = vadd.f32 %v1910_v4, %v847_v7 }
  0x87   : > { %v850_v9 = vsel %vm849_vm1, %v1910_v4, %v848_v8 }
  0xee   : > { %v843_v10 = vpop.xlane.xlu0 %842 }
  0xef   : > { %v851_v11 = vmul.f32 %v850_v9, %v843_v10 }
  0xf1   : > { %v852_v12 = vsub.f32 %v837_v1, %v851_v11 }
  0xf3   : > { %v853_v13 = vmul.f32 %v852_v12, %v852_v12 }
  0xf5   : > { %v854_v14 = vsel %vm840_vm0, %v853_v13, 0.0 }
  0xf6   : > { %855 = vadd.xlane.f32.xlu0 %v854_v14 }
 0x169   : > { %v856_v15 = vpop.xlane.xlu0 %855 }
 0x16a   : > { %v857_v16 = vmul.f32 %v856_v15, %v850_v9 }
 0x16c   : > { %v858_v17 = vadd.f32 1e-05, %v857_v16 }
 0x16e   : > { %1911 = vrsqrt.f32 %v858_v17  ;;  %vm865_vm3 = vweird.f32 %v858_v17 }
 0x174   : > { %v1912_v18 = vpop.eup %1911 }
 0x175   : > { %v860_v19 = vmul.f32 %v1912_v18, %v858_v17  ;;  %vm866_vm2 = vweird.f32 %v1912_v18 }
 0x176   : > { %vm867_vm4 = vmor %vm865_vm3, %vm866_vm2 }
 0x177   : > { %v861_v20 = vmul.f32 %v1912_v18, %v860_v19 }
 0x179   : > { %v862_v21 = vmul.f32 0.5, %v861_v20 }
 0x17b   : > { %v863_v22 = vsub.f32 1.5, %v862_v21 }
 0x17d   : > { %v864_v23 = vmul.f32 %v1912_v18, %v863_v22 }
 0x17f   : > { %v868_v25 = vsel %vm867_vm4, %v1912_v18, %v864_v23 }
 0x180   : > { %v869_v27 = vmul.f32 %v868_v25, %v852_v12 }
 0x182   : > { %v873_v28 = vmul.f32 %v1907_v24, %v869_v27 }
 0x184   : > { %v877_v29 = vadd.f32 %v1908_v26, %v873_v28 }
 0x186   : > { %878 = vst.msk [vmem:[#allocation2] sm:$0xff] %vm840_vm0, %v877_v29 }
 0x187 PF: > { %v1759_v30 = vld [vmem:[%s2564_s13 + $0x8] sm:$0xff]  ;;  %v1758_v31 = vld [vmem:[%s2564_s13] sm:$0xff]  ;;  %vm902_vm5 = vcmask 261120   ;;  %s2881_s28 = sld [smem:[#allocation39_spill]]  ;;  %s2232_s13 = smov 88   ;;  %vm929_vm6 = vcmask 64512  }
 0x188   : > { %912 = vmatpush.bf16.msra.mxu0 %v1759_v30  ;;  %s2233_s24 = smov 96   ;;  %s2234_s2 = smov 120   ;;  %v919_v46 = vld [vmem:[%s2569_s16] sm:$0xf]  ;;  %vm971_vm7 = vcmask 1043456   ;;  %vm1364_vm12 = vcmask 523264  }
 0x189   : > { %s2235_s19 = smov 80   ;;  %s2236_s20 = smov 72   ;;  %v1071_v49 = vsel %vm971_vm7, %v919_v46, 0  ;;  %v920_v30 = vld [vmem:[%s2569_s16 + $0x4] sm:$0xf] }
 0x18a   : > { %s2237_s10 = smov 112   ;;  %s2883_s26 = scalar_lea.vmem [#allocation6], %s2524_s27 }
 0x18b   : > { %v2645_v53 = vld [vmem:[%s2883_s26] ss:$0 sm:$0xff]  ;;  %s2238_s21 = smov 56   ;;  %s2239_s11 = smov 40  }
 0x18c   : > { %913 = vmatpush.bf16.msra.mxu0 %v1758_v31  ;;  %s2240_s15 = smov 64   ;;  %s2241_s29 = smov 104   ;;  %v1052_v31 = vsel %vm971_vm7, %v920_v30, 0 }
 0x18d   : > { %v2616_v32 = vld [vmem:[#allocation2] sm:$0xff]  ;;  %s2882_s12 = scalar_lea.vmem %s2881_s28, %s2554_s6  ;;  %s2242_s30 = smov 48  }
 0x18e   : > { %v881_v33 = vpack.c.bf16 %v2616_v32, %v2616_v32  ;;  %v1913_v34 = vld [vmem:[%s2882_s12] ss:$0 sm:$0xff]  ;;  %s2884_s3 = sld [smem:[#allocation41_spill]] }
 0x190   : > { %1710 = vmatmul.msk.bf16.vlgmr.msra.gmra.mxu0 %vm902_vm5, %v881_v33 }
 0x191   : > { %1061 = vmatpush.bf16.msrb.mxu0 %v1052_v31 }
 0x194   : > { %s2885_s18 = scalar_lea.vmem %s2884_s3, %s2554_s6 }
 0x20d   : > { %v915_v35 = vpop.f32.mrf.mxu0 }
 0x20e   : > { %v916_v36 = vadd.f32 %v1913_v34, %v915_v35 }
 0x210   : > { %v923_v37 = vpack.c.bf16 %v916_v36, %v916_v36 }
 0x212   : > { %v925_v38 = vunpack.c.l.b16 %v923_v37 }
 0x214   : > { %v2626_v39 = vpack.c.b16 %v925_v38, %v925_v38 }
 0x215   : > { %v917_v40 = vpop.f32.mrf.mxu0 }
 0x216   : > { %991 = vrot.lane.b32.xlu2 %v2626_v39, %s2232_s13  ;;  %927 = vrot.lane.b32.xlu0 %v2626_v39, %s2233_s24 }
 0x21e   : > { %989 = vrot.lane.b32.xlu2 %v2626_v39, %s2234_s2  ;;  %s2890_s2 = sld [smem:[#allocation23_spill]] }
 0x224   : > { %p1749_p12 = scmp.ne.s32.totalorder %s2890_s2, 1 }
 0x226   : > { %1088 = vrot.lane.b32.xlu2 %v2626_v39, %s2235_s19 }
 0x22e   : > { %1167 = vrot.lane.b32.xlu2 %v2626_v39, %s2236_s20 }
 0x236   : > { %1086 = vrot.lane.b32.xlu2 %v2626_v39, %s2237_s10 }
 0x270   : > { %v992_v41 = vpop.permute.xlu2 %991 }
 0x271   : > { %v997_v42 = vsel %vm929_vm6, %v992_v41, 0 }
 0x272   : > { %1006 = vmatpush.bf16.xpose.msra.mxu3 %v997_v42 }
 0x278   : > { %v990_v43 = vpop.permute.xlu2 %989 }
 0x279   : > { %1713 = vmatmul.msk.bf16.vlgmr.msra.gmra.mxu3 %vm929_vm6, %v990_v43 }
 0x280   : > { %v1089_v44 = vpop.permute.xlu2 %1088 }
 0x281   : > { %v1094_v45 = vsel %vm929_vm6, %v1089_v44, 0 }
 0x282   : > { %1103 = vmatpush.bf16.xpose.msrb.mxu3 %v1094_v45 }
 0x288   : > { %v1168_v47 = vpop.permute.xlu2 %1167  ;;  %v928_v48 = vpop.permute.xlu0 %927 }
 0x289   : > { %v934_v50 = vsel %vm929_vm6, %v928_v48, 0  ;;  %v1173_v52 = vsel %vm929_vm6, %v1168_v47, 0 }
 0x28a   : > { %943 = vmatpush.bf16.xpose.msra.mxu1 %v934_v50 }
 0x290   : > { %v1087_v51 = vpop.permute.xlu2 %1086 }
 0x291   : > { %1711 = vmatmul.msk.bf16.vlgmr.msra.gmra.mxu1 %vm929_vm6, %v923_v37  ;;  %1717 = vmatmul.msk.bf16.vlgmr.msrb.gmra.mxu3 %vm929_vm6, %v1087_v51 }
 0x292   : > { %1080 = vmatpush.bf16.msrb.mxu1 %v1071_v49 }
 0x296   : > { %1182 = vmatpush.bf16.xpose.msra.mxu1 %v1173_v52 }
 0x2fc   : > { %v1008_v54 = vpop.f32.mrf.mxu3 }
 0x2fd   : > { %v1012_v55 = vmul.f32 0.35355338, %v1008_v54 }
 0x2ff   : > { %v1013_v56 = vadd.f32 %v2645_v53, %v1012_v55 }
 0x301   : > { %v1014_v57 = vsel %vm929_vm6, %v1013_v56, -inf }
 0x302   : > { %1015 = vmax.xlane.f32.xlu2 %v1014_v57 }
 0x304   : > { %v1010_v58 = vpop.f32.mrf.mxu3 }
 0x30e   : > { %v945_v59 = vpop.f32.mrf.mxu1 }
 0x30f   : > { %v949_v60 = vmul.f32 0.35355338, %v945_v59 }
 0x311   : > { %v953_v61 = vadd.f32 %v2645_v53, %v949_v60 }
 0x313   : > { %v954_v62 = vsel %vm929_vm6, %v953_v61, -inf }
 0x314   : > { %v1105_v63 = vpop.f32.mrf.mxu3  ;;  %955 = vmax.xlane.f32.xlu0 %v954_v62 }
 0x315   : > { %v1109_v0 = vmul.f32 0.35355338, %v1105_v63  ;;  %v922_v63 = vld [vmem:[%s2569_s16 + $0xc] sm:$0xf] }
 0x316   : > { %v947_v1 = vpop.f32.mrf.mxu1 }
 0x317   : > { %v2652_v2 = vadd.f32 %v2645_v53, %v1109_v0 }
 0x319   : > { %v1111_v3 = vsel %vm929_vm6, %v2652_v2, -inf }
 0x31c   : > { %v1107_v4 = vpop.f32.mrf.mxu3  ;;  %1112 = vmax.xlane.f32.xlu0 %v1111_v3 }
 0x31d   : > { %v1228_v4 = vsel %vm971_vm7, %v922_v63, 0 }
 0x375   : > { %v1016_v5 = vpop.xlane.xlu2 %1015 }
 0x376   : > { %v1017_v6 = vsub.f32 %v1013_v56, %v1016_v5 }
 0x378   : > { %v1018_v7 = vmul.f32 1.442695, %v1017_v6 }
 0x37a   : > { %1922 = vpow2.f32 %v1018_v7 }
 0x380   : > { %v1923_v8 = vpop.eup %1922 }
 0x381   : > { %v1020_v9 = vsel %vm929_vm6, %v1923_v8, 0.0 }
 0x382   : > { %1021 = vadd.xlane.f32.xlu0 %v1020_v9 }
 0x387   : > { %v956_v10 = vpop.xlane.xlu0 %955 }
 0x388   : > { %v957_v11 = vsub.f32 %v953_v61, %v956_v10 }
 0x38a   : > { %v958_v12 = vmul.f32 1.442695, %v957_v11 }
 0x38c   : > { %1924 = vpow2.f32 %v958_v12 }
 0x38f   : > { %v1113_v15 = vpop.xlane.xlu0 %1112 }
 0x390   : > { %v1114_v43 = vsub.f32 %v2652_v2, %v1113_v15 }
 0x392   : > { %v1925_v13 = vpop.eup %1924  ;;  %v1115_v44 = vmul.f32 1.442695, %v1114_v43  ;;  %v1764_v43 = vld [vmem:[%s2596_s1 + $0x10] sm:$0xff] }
 0x393   : > { %v960_v14 = vsel %vm929_vm6, %v1925_v13, 0.0 }
 0x394   : > { %961 = vadd.xlane.f32.xlu1 %v960_v14 }
 0x396   : > { %1026 = vrot.lane.b32.xlu0 %v2626_v39, %s2238_s21 }
 0x39e   : > { %1202 = vrot.lane.b32.xlu0 %v2626_v39, %s2239_s11 }
 0x3ad   : > { %966 = vrot.lane.b32.xlu1 %v2626_v39, %s2240_s15 }
 0x3b5   : > { %1165 = vrot.lane.b32.xlu1 %v2626_v39, %s2241_s29 }
 0x3f5   : > { %v1022_v16 = vpop.xlane.xlu0 %1021 }
 0x407   : > { %v962_v20 = vpop.xlane.xlu1 %961 }
 0x408   : > { %v1027_v17 = vpop.permute.xlu0 %1026  ;;  %1926 = vrcp.f32 %v962_v20 }
 0x409   : > { %v1032_v25 = vsel %vm971_vm7, %v1027_v17, 0  ;;  %1928 = vrcp.f32 %v1022_v16  ;;  %v1915_v17 = vld [vmem:[%s2885_s18] ss:$0 sm:$0xff] }
 0x40a   : > { %1930 = vpow2.f32 %v1115_v44 }
 0x40e   : > { %v1927_v21 = vpop.eup %1926 }
 0x40f   : > { %v964_v22 = vmul.f32 %v1927_v21, %v1925_v13  ;;  %v1929_v27 = vpop.eup %1928 }
 0x410   : > { %v1203_v18 = vpop.permute.xlu0 %1202  ;;  %v1024_v28 = vmul.f32 %v1929_v27, %v1923_v8  ;;  %v1931_v54 = vpop.eup %1930 }
 0x411   : > { %v1208_v19 = vsel %vm971_vm7, %v1203_v18, 0  ;;  %v965_v26 = vpack.c.bf16 %v964_v22, %v964_v22  ;;  %v1117_v55 = vsel %vm929_vm6, %v1931_v54, 0.0 }
 0x412   : > { %1217 = vmatpush.bf16.msra.mxu3 %v1208_v19  ;;  %v1025_v29 = vpack.c.bf16 %v1024_v28, %v1024_v28 }
 0x41f   : > { %v967_v23 = vpop.permute.xlu1 %966 }
 0x420   : > { %v973_v24 = vsel %vm971_vm7, %v967_v23, 0 }
 0x421   : > { %982 = vmatpush.bf16.msra.mxu2 %v973_v24 }
 0x424   : > { %1712 = vmatmul.msk.bf16.vlgmr.msra.gmra.mxu2 %vm929_vm6, %v965_v26 }
 0x425   : > { %1041 = vmatpush.bf16.msrb.mxu2 %v1032_v25  ;;  %v2243_v25 = vmov 32.0  }
 0x427   : > { %v1166_v38 = vpop.permute.xlu1 %1165 }
 0x434   : > { %1714 = vmatmul.msk.bf16.vlgmr.msrb.gmra.mxu2 %vm929_vm6, %v1025_v29 }
 0x4a7   : > { %v984_v33 = vpop.f32.mrf.mxu2 }
 0x4a8   : > { %v988_v34 = vpack.c.bf16 %v984_v33, %v984_v33 }
 0x4aa   : > { %1716 = vmatmul.msk.bf16.vlgmr.msrb.gmra.mxu1 %vm929_vm6, %v988_v34 }
 0x4af   : > { %v986_v35 = vpop.f32.mrf.mxu2 }
 0x4b7   : > { %v1043_v36 = vpop.f32.mrf.mxu2 }
 0x4b8   : > { %v1047_v37 = vpack.c.bf16 %v1043_v36, %v1043_v36 }
 0x4ba   : > { %1715 = vmatmul.msk.bf16.vlgmr.msrb.gmra.mxu0 %vm929_vm6, %v1047_v37  ;;  %1720 = vmatmul.msk.bf16.vlgmr.msra.gmra.mxu1 %vm929_vm6, %v1166_v38  ;;  %v1761_v37 = vld [vmem:[%s2582_s5 + $0x8] sm:$0xff]  ;;  %v1760_v38 = vld [vmem:[%s2582_s5] sm:$0xff] }
 0x4bf   : > { %v1045_v40 = vpop.f32.mrf.mxu2 }
 0x4c0   : > { %v1765_v40 = vld [vmem:[%s2596_s1 + $0x18] sm:$0xff] }
 0x4c1   : > { %1372 = vmatpush.bf16.msrb.mxu1 %v1765_v40 }
 0x4c5   : > { %1373 = vmatpush.bf16.msrb.mxu1 %v1764_v43 }
 0x527   : > { %v1082_v41 = vpop.f32.mrf.mxu1 }
 0x52f   : > { %v1084_v42 = vpop.f32.mrf.mxu1 }
 0x537   : > { %v1063_v45 = vpop.f32.mrf.mxu0  ;;  %v1184_v46 = vpop.f32.mrf.mxu1 }
 0x538   : > { %v1083_v47 = vadd.f32 %v1082_v41, %v1063_v45  ;;  %v1188_v48 = vmul.f32 0.35355338, %v1184_v46 }
 0x53a   : > { %v1189_v49 = vadd.f32 %v2645_v53, %v1188_v48 }
 0x53c   : > { %v1190_v50 = vsel %vm929_vm6, %v1189_v49, -inf }
 0x53d   : > { %1191 = vmax.xlane.f32.xlu1 %v1190_v50 }
 0x53f   : > { %v1065_v51 = vpop.f32.mrf.mxu0  ;;  %v1186_v52 = vpop.f32.mrf.mxu1 }
 0x540   : > { %v1916_v51 = vld [vmem:[%s811_s25] ss:$0 sm:$0xff] }
 0x545   : > { %1118 = vadd.xlane.f32.xlu1 %v1117_v55 }
 0x5b0   : > { %v1192_v56 = vpop.xlane.xlu1 %1191 }
 0x5b1   : > { %v1193_v57 = vsub.f32 %v1189_v49, %v1192_v56 }
 0x5b3   : > { %v1194_v58 = vmul.f32 1.442695, %v1193_v57 }
 0x5b5   : > { %1932 = vpow2.f32 %v1194_v58 }
 0x5b8   : > { %v1119_v53 = vpop.xlane.xlu1 %1118 }
 0x5b9   : > { %1934 = vrcp.f32 %v1119_v53  ;;  %v1918_v53 = vld [vmem:[%s819_s23] ss:$0 sm:$0xff] }
 0x5bb   : > { %v1933_v59 = vpop.eup %1932 }
 0x5bc   : > { %v1196_v60 = vsel %vm929_vm6, %v1933_v59, 0.0 }
 0x5bd   : > { %1197 = vadd.xlane.f32.xlu2 %v1196_v60  ;;  %v1762_v60 = vld [vmem:[%s2596_s1] sm:$0xff] }
 0x5bf   : > { %v1935_v62 = vpop.eup %1934 }
 0x5c0   : > { %v1121_v1 = vmul.f32 %v1935_v62, %v1931_v54  ;;  %v1917_v54 = vld [vmem:[%s2545_s8] ss:$0 sm:$0xff] }
 0x5c2   : > { %v1122_v7 = vpack.c.bf16 %v1121_v1, %v1121_v1 }
 0x5d5   : > { %1123 = vrot.lane.b32.xlu2 %v2626_v39, %s2242_s30  ;;  %v921_v39 = vld [vmem:[%s2569_s16 + $0x8] sm:$0xf] }
 0x5d6   : > { %v1149_v8 = vsel %vm971_vm7, %v921_v39, 0 }
 0x5d7   : > { %1158 = vmatpush.bf16.msra.mxu0 %v1149_v8 }
 0x5db   : > { %1319 = vmatpush.bf16.msrb.mxu0 %v1761_v37 }
 0x5df   : > { %1320 = vmatpush.bf16.msrb.mxu0 %v1760_v38 }
 0x630   : > { %v1198_v61 = vpop.xlane.xlu2 %1197 }
 0x631   : > { %1936 = vrcp.f32 %v1198_v61 }
 0x632   : > { %1938 = vrcp.f32 %v2243_v25 }
 0x637   : > { %v1937_v0 = vpop.eup %1936 }
 0x638   : > { %v1200_v2 = vmul.f32 %v1937_v0, %v1933_v59  ;;  %v1124_v3 = vpop.permute.xlu2 %1123  ;;  %v1939_v26 = vpop.eup %1938  ;;  %v1763_v59 = vld [vmem:[%s2596_s1 + $0x8] sm:$0xff] }
 0x639   : > { %v1129_v5 = vsel %vm971_vm7, %v1124_v3, 0  ;;  %v1256_v27 = vmul.f32 32.0, %v1939_v26  ;;  %vm1260_vm8 = vweird.f32 %v1939_v26  ;;  %1374 = vmatpush.bf16.msrb.mxu1 %v1763_v59 }
 0x63a   : > { %v1201_v6 = vpack.c.bf16 %v1200_v2, %v1200_v2  ;;  %1138 = vmatpush.bf16.msra.mxu2 %v1129_v5  ;;  %v1919_v2 = vld [vmem:[%s827_s0] ss:$0 sm:$0xff] }
 0x63b   : > { %v1257_v28 = vsub.f32 1.0, %v1256_v27 }
 0x63c   : > { %1721 = vmatmul.msk.bf16.vlgmr.msra.gmra.mxu3 %vm929_vm6, %v1201_v6 }
 0x63d   : > { %1718 = vmatmul.msk.bf16.vlgmr.msra.gmra.mxu2 %vm929_vm6, %v1122_v7  ;;  %v1258_v29 = vmul.f32 %v1939_v26, %v1257_v28  ;;  %1375 = vmatpush.bf16.msrb.mxu1 %v1762_v60 }
 0x63e   : > { %1237 = vmatpush.bf16.msrb.mxu2 %v1228_v4 }
 0x63f   : > { %v1259_v30 = vadd.f32 %v1939_v26, %v1258_v29 }
 0x641   : > { %v1261_v31 = vsel %vm1260_vm8, %v1939_v26, %v1259_v30 }
 0x6bf   : > { %v1219_v9 = vpop.f32.mrf.mxu3 }
 0x6c0   : > { %v1223_v10 = vpack.c.bf16 %v1219_v9, %v1219_v9  ;;  %v1140_v11 = vpop.f32.mrf.mxu2 }
 0x6c1   : > { %v1144_v12 = vpack.c.bf16 %v1140_v11, %v1140_v11 }
 0x6c2   : > { %1722 = vmatmul.msk.bf16.vlgmr.msrb.gmra.mxu2 %vm929_vm6, %v1223_v10 }
 0x6c3   : > { %1719 = vmatmul.msk.bf16.vlgmr.msra.gmra.mxu0 %vm929_vm6, %v1144_v12 }
 0x6c7   : > { %v1221_v13 = vpop.f32.mrf.mxu3 }
 0x6c8   : > { %v1142_v14 = vpop.f32.mrf.mxu2 }
 0x740   : > { %v1160_v15 = vpop.f32.mrf.mxu0 }
 0x741   : > { %v1164_v16 = vadd.f32 %v1160_v15, %v1083_v47 }
 0x745   : > { %v1239_v18 = vpop.f32.mrf.mxu2 }
 0x746   : > { %v1243_v19 = vadd.f32 %v1239_v18, %v1164_v16 }
 0x748   : > { %v1248_v20 = vadd.f32 %v1915_v17, %v1243_v19  ;;  %v1162_v21 = vpop.f32.mrf.mxu0 }
 0x749   : > { %v1920_v21 = vld [vmem:[%s830_s9] ss:$0 sm:$0xff] }
 0x74a   : > { %v1249_v22 = vadd.f32 %v1248_v20, %v2616_v32 }
 0x74c   : > { %v1252_v23 = vsel %vm902_vm5, %v1249_v22, 0.0 }
 0x74d   : > { %v1241_v24 = vpop.f32.mrf.mxu2  ;;  %1253 = vadd.xlane.f32.xlu1 %v1252_v23  ;;  %v1921_v23 = vld [vmem:[%s2602_s17] ss:$0 sm:$0xff] }
 0x7c0   : > { %v1254_v33 = vpop.xlane.xlu1 %1253 }
 0x7c1   : > { %v1262_v34 = vmul.f32 %v1261_v31, %v1254_v33 }
 0x7c3   : > { %v1263_v32 = vsub.f32 %v1249_v22, %v1262_v34 }
 0x7c5   : > { %v1264_v35 = vmul.f32 %v1263_v32, %v1263_v32 }
 0x7c7   : > { %v1265_v36 = vsel %vm902_vm5, %v1264_v35, 0.0 }
 0x7c8   : > { %1266 = vadd.xlane.f32.xlu0 %v1265_v36 }
 0x83b   : > { %v1267_v41 = vpop.xlane.xlu0 %1266 }
 0x83c   : > { %v1268_v42 = vmul.f32 %v1267_v41, %v1261_v31 }
 0x83e   : > { %v1269_v44 = vadd.f32 1e-05, %v1268_v42 }
 0x840   : > { %1940 = vrsqrt.f32 %v1269_v44  ;;  %vm1276_vm10 = vweird.f32 %v1269_v44 }
 0x846   : > { %v1941_v45 = vpop.eup %1940 }
 0x847   : > { %v1271_v46 = vmul.f32 %v1941_v45, %v1269_v44  ;;  %vm1277_vm9 = vweird.f32 %v1941_v45 }
 0x848   : > { %vm1278_vm11 = vmor %vm1276_vm10, %vm1277_vm9 }
 0x849   : > { %v1272_v47 = vmul.f32 %v1941_v45, %v1271_v46 }
 0x84b   : > { %v1273_v48 = vmul.f32 0.5, %v1272_v47 }
 0x84d   : > { %v1274_v49 = vsub.f32 1.5, %v1273_v48 }
 0x84f   : > { %v1275_v50 = vmul.f32 %v1941_v45, %v1274_v49 }
 0x851   : > { %v1279_v52 = vsel %vm1278_vm11, %v1941_v45, %v1275_v50 }
 0x852   : > { %v1280_v55 = vmul.f32 %v1279_v52, %v1263_v32 }
 0x854   : > { %v1284_v56 = vmul.f32 %v1916_v51, %v1280_v55 }
 0x856   : > { %v1288_v57 = vadd.f32 %v1917_v54, %v1284_v56 }
 0x858   : > { %v1289_v58 = vpack.c.bf16 %v1288_v57, %v1288_v57 }
 0x85a   : > { %1731 = vmatmul.msk.bf16.vlgmr.msrb.gmra.mxu0 %vm902_vm5, %v1289_v58 }
 0x8d7   : > { %v1322_v61 = vpop.f32.mrf.mxu0 }
 0x8d8   : > { %v1323_v62 = vadd.f32 %v1918_v53, %v1322_v61 }
 0x8da   : > { %v1326_v63 = vmax.f32 %v1323_v62, 0.0 }
 0x8dc   : > { %v1327_v0 = vpack.c.bf16 %v1326_v63, %v1326_v63 }
 0x8de   : > { %1748 = vmatmul.msk.bf16.vlgmr.msrb.gmra.mxu1 %vm1364_vm12, %v1327_v0 }
 0x8df   : > { %v1324_v1 = vpop.f32.mrf.mxu0 }
 0x95b   : > { %v1377_v3 = vpop.f32.mrf.mxu1 }
 0x95c   : > { %v1378_v4 = vadd.f32 %v1919_v2, %v1377_v3 }
 0x95e   : > { %v1381_v5 = vadd.f32 %v1378_v4, %v1288_v57 }
 0x960   : > { %v1384_v6 = vsel %vm902_vm5, %v1381_v5, 0.0 }
 0x961   : > { %1385 = vadd.xlane.f32.xlu1 %v1384_v6 }
 0x963   : > { %v1379_v7 = vpop.f32.mrf.mxu1 }
 0x9d4   : > { %v1386_v39 = vpop.xlane.xlu1 %1385 }
 0x9d5   : > { %v1387_v8 = vmul.f32 %v1386_v39, %v1261_v31 }
 0x9d7   : > { %v1388_v9 = vsub.f32 %v1381_v5, %v1387_v8 }
 0x9d9   : > { %v1389_v10 = vmul.f32 %v1388_v9, %v1388_v9 }
 0x9db   : > { %v1390_v11 = vsel %vm902_vm5, %v1389_v10, 0.0 }
 0x9dc   : > { %1391 = vadd.xlane.f32.xlu1 %v1390_v11 }
 0xa4f   : > { %v1392_v12 = vpop.xlane.xlu1 %1391 }
 0xa50   : > { %v1393_v13 = vmul.f32 %v1392_v12, %v1261_v31 }
 0xa52   : > { %v1394_v14 = vadd.f32 1e-05, %v1393_v13 }
 0xa54   : > { %1942 = vrsqrt.f32 %v1394_v14  ;;  %vm1401_vm14 = vweird.f32 %v1394_v14 }
 0xa5a   : > { %v1943_v15 = vpop.eup %1942 }
 0xa5b   : > { %v1396_v16 = vmul.f32 %v1943_v15, %v1394_v14  ;;  %vm1402_vm13 = vweird.f32 %v1943_v15 }
 0xa5c   : > { %vm1403_vm15 = vmor %vm1401_vm14, %vm1402_vm13 }
 0xa5d   : > { %v1397_v17 = vmul.f32 %v1943_v15, %v1396_v16 }
 0xa5f   : > { %v1398_v18 = vmul.f32 0.5, %v1397_v17 }
 0xa61   : > { %v1399_v19 = vsub.f32 1.5, %v1398_v18 }
 0xa63   : > { %v1400_v20 = vmul.f32 %v1943_v15, %v1399_v19 }
 0xa65   : > { %v1404_v22 = vsel %vm1403_vm15, %v1943_v15, %v1400_v20 }
 0xa66   : > { %v1405_v24 = vmul.f32 %v1404_v22, %v1388_v9 }
 0xa68   : > { %v1409_v25 = vmul.f32 %v1920_v21, %v1405_v24  ;;  %1418 = sbr.rel (%p1749_p12) target bundleno = 2670 (0xa6e), region = 112 }
 0xa6a   : > { %v1413_v26 = vadd.f32 %v1921_v23, %v1409_v25 }
 0xa6c   : > { %1414 = vst.msk [vmem:[#allocation2] sm:$0xff] %vm902_vm5, %v1413_v26 }
 0xa6d   : > { %1419 = vst.msk [vmem:[%s2604_s4] sm:$0xff] %vm902_vm5, %v1413_v26 }
 0xa6e PF: > { %s2891_s19 = sld [smem:[#allocation24_spill]]  ;;  %s1433_s21 = sshll.u32 %s2604_s4, 4  ;;  %s1434_s21 = int_to_ptr.vmem [resolvable:$true] %s1433_s21 }
 0xa6f   : > { %s2893_s17 = sld [smem:[#allocation50_spill]]  ;;  %s1421_s15 = scalar_lea.sflag [#allocation5], %s2524_s27 }
 0xa74   : > { %s1751_s9 = sshll.u32 %s2891_s19, 3 }
 0xa75   : > { %s1431_s26 = scalar_lea.hbm %s2893_s17, %s1751_s9  ;;  %s2114_s3 = scalar_lea.hbm %s2893_s17, 16 }
 0xa76   : > { %s1435_s11 = sshll.u32 %s1431_s26, 4  ;;  %s1436_s11 = int_to_ptr.hbm [resolvable:$true] %s1435_s11 }
 0xa77   : > { %s2108_s29 = sshra.s32 %s1436_s11, 4  ;;  %s2109_s29 = int_to_ptr.hbm [resolvable:$true] %s2108_s29 }
 0xa78   : > { %s2110_s30 = scalar_lea.hbm %s2109_s29, 8  ;;  %p2115_p10 = scmp.lt.s32.totalorder %s2109_s29, %s2893_s17 }
 0xa79   : > { %p2111_p3 = scmp.ne.s32.totalorder %s2109_s29, %s2110_s30  ;;  %p2116_p8 = scmp.lt.s32.totalorder %s2114_s3, %s2110_s30 }
 0xa7b   : > { %p2112_p6 = pnand %p2111_p3, %p2476_p11  ;;  %p2117_p7 = por %p2116_p8, %p2115_p10 }
 0xa7d   : > { %p2113_p9 = pneg %p2112_p6 }
 0xa7f   : > { %p2118_p0 = pnand %p2117_p7, %p2113_p9 }
 0xa81   : > { %2121 = shalt.err (!%p2118_p0)
}
 0xa82   : > { %1778 = dma.vmem_to_hbm [thread:$0]  (%p2476_p11), %s1434_s21, 128, %s1436_s11, %s1421_s15  }
 0xa83 PF: > { %s2894_s27 = sld [smem:[#allocation27_spill]] }
 0xa84   : > { %s2895_s4 = sld [smem:[#allocation20_spill]] }
 0xa89   : > { %p1804_p2 = scmp.ge.s32.totalorder %s2894_s27, 2 }
 0xa8a   : > { %s1447_s7 = sand.u32 1, %s2895_s4  }
 0xa8b   : > { %p1798_p5 = pnand %p1804_p2, %p2491_p13  ;;  %s1448_s28 = scalar_lea.sflag [#allocation5], %s1447_s7 }
 0xa8d   : > { %p1799_p4 = pneg %p1798_p5 }
 0xa8f   : > { %2183 = dma.done.wait (%p1799_p4), %s1448_s28, 128  }
 0xa90   : > { %2185 = vsyncadd (%p1799_p4), %s1448_s28, 4294967168  ;;  %s38_s0 = sadd.s32 1, %s2894_s27   ;;  %s2897_s21 = sld [smem:[#allocation18_spill]] }
 0xa91   : > { %p35_p1 = scmp.ge.s32.totalorder %s38_s0, 6   ;;  %s2898_s22 = sld [smem:[#allocation19_spill]] }
 0xa92   : > { %s2899_s23 = sld [smem:[#allocation29_spill]] }
 0xa93   : > { %s2900_s24 = sld [smem:[#allocation21_spill]] }
 0xa94   : > { %s2901_s25 = sld [smem:[#allocation22_spill]] }
 0xa95   : > { %s2902_s26 = sld [smem:[#allocation33_spill]]  ;;  %37 = sbr.rel (!%p35_p1) target bundleno = 31 (0x1f), region = 208 }
 0xa96   : > { %s2903_s27 = sld [smem:[#allocation25_spill]] }
 0xa97   : > { %s2904_s28 = sld [smem:[#allocation26_spill]] }
 0xa98   : > { %s2905_s29 = sld [smem:[#allocation28_spill]] }
 0xa99   : > { %s2906_s30 = sld [smem:[#allocation31_spill]] }
 0xa9a   :  { %1454 = vsyncpa [#allocation4], 1 }
 0xa9b   :  { %1456 = vsyncpa [#allocation4 + $0x1], 1 }
 0xa9c   :  { %1457 = vsyncpa [#allocation7], 1 }
 0xa9d   :  { %1459 = vsyncpa [#allocation7 + $0x1], 1 }
 0xa9e   :  { %1460 = vsyncpa [#allocation10], 1 }
 0xa9f   :  { %1462 = vsyncpa [#allocation10 + $0x1], 1 }
 0xaa0   :  { %1463 = vsyncpa [#allocation5], 1 }
 0xaa1   :  { %1465 = vsyncpa [#allocation5 + $0x1], 1 }

</bundles_post_ra>
